<compile_context>
chip_gen: v7x
topology: tpu7x:2x2x1
jax: 0.10.0
libtpu: 0.0.40
codegen_flags: <defaults>
</compile_context>

<pallas_src>
import numpy as np

import jax
import jax.numpy as jnp
from jax import lax
from jax.experimental import pallas as pl
from jax.experimental.pallas import tpu as pltpu


# ---------------------------------------------------------------------------
# Weight preprocessing (runs once, outside the kernel / hot path).
# ---------------------------------------------------------------------------
def _shift_eye(n, k):
    """(n, n) matrix S with S[i, o] = 1 iff i == o + k - 1   (k in {0, 1, 2})."""
    s = np.zeros((n, n), np.float32)
    for o in range(n):
        i = o + k - 1
        if 0 <= i < n:
            s[i, o] = 1.0
    return s


def _band_weights(w, H, W):
    """(3,3,3,Cin,Cout) DHWIO conv kernel -> (3, H*W*Cin, H*W*Cout) block-Toeplitz
    matrices, one per depth tap kd.  'same' padding along H and W is baked into
    the band (out-of-range taps simply have zero rows)."""
    Cin, Cout = int(w.shape[3]), int(w.shape[4])
    Sh = np.stack([_shift_eye(H, k) for k in range(3)])   # (3, H, H): [kh, hi, ho]
    Sw = np.stack([_shift_eye(W, k) for k in range(3)])   # (3, W, W): [kw, wi, wo]
    # band[kd, hi, wi, ci, ho, wo, co] = w[kd, hi-ho+1, wi-wo+1, ci, co] (if valid)
    band = jnp.einsum('bPh,cQw,abcio->aPQihwo', Sh, Sw, jnp.asarray(w, jnp.float32))
    return band.reshape(3, H * W * Cin, H * W * Cout)


def prepare_params(params, H, W):
    """Transform raw (DHWIO) conv weights / biases into the fused-kernel layout."""
    return {
        "wb1": _band_weights(params["w1"], H, W),
        "bf1": jnp.tile(jnp.asarray(params["b1"], jnp.float32), H * W).reshape(1, -1),
        "wb2": _band_weights(params["w2"], H, W),
        "bf2": jnp.tile(jnp.asarray(params["b2"], jnp.float32), H * W).reshape(1, -1),
    }


# ---------------------------------------------------------------------------
# Fused kernel: one batch sample per grid step.
# ---------------------------------------------------------------------------
def _resblock_kernel(x_ref, wb1_ref, b1_ref, wb2_ref, b2_ref, o_ref):
    # x_ref  : (1, D, H*W*C)   lane-dense activation block
    # wb*_ref: (3, H*W*Cin, H*W*Cout) block-Toeplitz weights (one per depth tap)
    # b*_ref : (1, H*W*Cout)   bias pre-tiled to the lane layout
    # o_ref  : (1, D, H*W*Cout)
    D = x_ref.shape[1]
    x = x_ref[0]                                   # (D, H*W*C)

    # Depth-shift matrices (built once, shared by both convs).  Applied on the
    # output side: (s_dn @ Y)[d] = Y[d-1] (zero at d=0), (s_up @ Y)[d] = Y[d+1]
    # (zero at d=D-1) -- this implements the zero padding along D.
    ro = lax.broadcasted_iota(jnp.int32, (D, D), 0)    # output row index
    di = lax.broadcasted_iota(jnp.int32, (D, D), 1)    # input  row index
    s_dn = (di == ro - 1).astype(jnp.float32)
    s_up = (di == ro + 1).astype(jnp.float32)

    def conv3d(inp, wb_ref, b_ref):
        # out[d] = inp[d-1] @ wb[0] + inp[d] @ wb[1] + inp[d+1] @ wb[2] + bias
        y0 = jnp.dot(inp, wb_ref[0], preferred_element_type=jnp.float32)
        y1 = jnp.dot(inp, wb_ref[1], preferred_element_type=jnp.float32)
        y2 = jnp.dot(inp, wb_ref[2], preferred_element_type=jnp.float32)
        y = y1 + jnp.dot(s_dn, y0, preferred_element_type=jnp.float32)
        y = y + jnp.dot(s_up, y2, preferred_element_type=jnp.float32)
        return y + b_ref[...]                      # bias broadcasts over D rows

    h = jnp.maximum(conv3d(x, wb1_ref, b1_ref), 0.0)          # conv1 + ReLU (stays on-chip)
    y = jnp.maximum(conv3d(h, wb2_ref, b2_ref) + x, 0.0)      # conv2 + skip + ReLU
    o_ref[0] = y.astype(o_ref.dtype)


@jax.jit
def residual_block3d(x, prepared):
    """Forward pass of ResidualBlock3D (norm=None, sn=False, stride=1).

    x        : (N, D, H, W, C) float32, channels-last (PyTorch NCDHW transposed)
    prepared : output of prepare_params()
    """
    N, D, H, W, C = x.shape
    wb1, bf1 = prepared["wb1"], prepared["bf1"]
    wb2, bf2 = prepared["wb2"], prepared["bf2"]
    F_in, F_out = wb1.shape[1], wb1.shape[2]
    Cout = F_out // (H * W)

    x_flat = x.reshape(N, D, H * W * C)            # free, contiguous reshape

    y = pl.pallas_call(
        _resblock_kernel,
        out_shape=jax.ShapeDtypeStruct((N, D, F_out), jnp.float32),
        grid_spec=pltpu.PrefetchScalarGridSpec(
            num_scalar_prefetch=0,
            grid=(N,),
            in_specs=[
                pl.BlockSpec((1, D, F_in), lambda n: (n, 0, 0)),
                pl.BlockSpec(wb1.shape, lambda n: (0, 0, 0)),
                pl.BlockSpec(bf1.shape, lambda n: (0, 0)),
                pl.BlockSpec(wb2.shape, lambda n: (0, 0, 0)),
                pl.BlockSpec(bf2.shape, lambda n: (0, 0)),
            ],
            out_specs=pl.BlockSpec((1, D, F_out), lambda n: (n, 0, 0)),
        ),
        compiler_params=pltpu.CompilerParams(
            dimension_semantics=("parallel",),     # N samples -> 2 TCs on v7x
            vmem_limit_bytes=32 * 1024 * 1024,     # fits all generations (v7x: 64 MiB/TC)
        ),
    )(x_flat, wb1, bf1, wb2, bf2)

    return y.reshape(N, D, H, W, Cout)


# ---------------------------------------------------------------------------
# Pure-JAX reference (lax.conv) for the correctness check.
# ---------------------------------------------------------------------------
def _ref_forward(x, params):
    dn = lax.conv_dimension_numbers(x.shape, params["w1"].shape,
                                    ("NDHWC", "DHWIO", "NDHWC"))

    def conv(x_, w_, b_):
        y = lax.conv_general_dilated(x_, w_, (1, 1, 1), [(1, 1)] * 3,
                                     dimension_numbers=dn,
                                     precision=lax.Precision.HIGHEST)
        return y + b_[None, None, None, None, :]

    h = jax.nn.relu(conv(x, params["w1"], params["b1"]))
    return jax.nn.relu(conv(h, params["w2"], params["b2"]) + x)


if __name__ == "__main__":
    key = jax.random.PRNGKey(0)
    k1, k2, k3, k4, k5 = jax.random.split(key, 5)

    # PyTorch-equivalent input: NCDHW = (2, 4, 8, 8, 8); NDHWC here.
    N, C, D, H, W = 2, 4, 8, 8, 8
    x = jax.random.normal(k1, (N, D, H, W, C), jnp.float32)

    params = {
        "w1": jax.random.normal(k2, (3, 3, 3, C, C), jnp.float32) * 0.1,
        "b1": jax.random.normal(k3, (C,), jnp.float32) * 0.1,
        "w2": jax.random.normal(k4, (3, 3, 3, C, C), jnp.float32) * 0.1,
        "b2": jax.random.normal(k5, (C,), jnp.float32) * 0.1,
    }

    prepared = prepare_params(params, H, W)        # weight transform done once

    out = residual_block3d(x, prepared)
    jax.block_until_ready(out)

    ref = _ref_forward(x, params)
    err = float(jnp.max(jnp.abs(out - ref)))
    # f32 MXU accumulation typically lands at ~1e-5 here; the 1e-2 gate is kept
    # loose enough to be robust to MXU pass behaviour while still catching any
    # layout / weight-transform bug (those show up as O(0.1 .. 1) errors).
    assert err < 1e-2, f"mismatch vs reference: max abs err = {err}"

    print("KERNEL_OK")
</pallas_src>

<mosaic_0001>
module attributes {stable_mosaic.version = 11 : i64} {
  func.func @_resblock_kernel(%arg0: i32, %arg1: memref<1x8x256xf32, #tpu.memory_space<vmem>>, %arg2: memref<3x256x256xf32, #tpu.memory_space<vmem>>, %arg3: memref<1x256xf32, #tpu.memory_space<vmem>>, %arg4: memref<3x256x256xf32, #tpu.memory_space<vmem>>, %arg5: memref<1x256xf32, #tpu.memory_space<vmem>>, %arg6: memref<1x8x256xf32, #tpu.memory_space<vmem>>) attributes {dimension_semantics = [#tpu.dimension_semantics<parallel>], iteration_bounds = array<i64: 2>, scalar_prefetch = 0 : i64, scratch_operands = 0 : i64, tpu.core_type = #tpu.core_type<tc>, window_params = [{transform_indices = @transform_0, window_bounds = array<i64: 1, 8, 256>}, {pipeline_mode = #tpu.pipeline_mode<synchronous>, transform_indices = @transform_1, window_bounds = array<i64: 3, 256, 256>}, {pipeline_mode = #tpu.pipeline_mode<synchronous>, transform_indices = @transform_2, window_bounds = array<i64: 1, 256>}, {pipeline_mode = #tpu.pipeline_mode<synchronous>, transform_indices = @transform_3, window_bounds = array<i64: 3, 256, 256>}, {pipeline_mode = #tpu.pipeline_mode<synchronous>, transform_indices = @transform_4, window_bounds = array<i64: 1, 256>}, {transform_indices = @transform_5, window_bounds = array<i64: 1, 8, 256>}]} {
    %c0 = arith.constant 0 : index
    %c0_0 = arith.constant 0 : index
    %c0_1 = arith.constant 0 : index
    %0 = vector.load %arg1[%c0, %c0_0, %c0_1] : memref<1x8x256xf32, #tpu.memory_space<vmem>>, vector<1x8x256xf32>
    %1 = vector.shape_cast %0 : vector<1x8x256xf32> to vector<8x256xf32>
    %2 = tpu.iota {dimensions = array<i32: 0>} : vector<8x8xi32>
    %3 = tpu.iota {dimensions = array<i32: 1>} : vector<8x8xi32>
    %c1_i32 = arith.constant 1 : i32
    %4 = vector.broadcast %c1_i32 : i32 to vector<8x8xi32>
    %5 = arith.subi %2, %4 : vector<8x8xi32>
    %6 = arith.cmpi eq, %3, %5 : vector<8x8xi32>
    %7 = arith.extui %6 : vector<8x8xi1> to vector<8x8xi32>
    %8 = arith.sitofp %7 : vector<8x8xi32> to vector<8x8xf32>
    %c1_i32_2 = arith.constant 1 : i32
    %9 = vector.broadcast %c1_i32_2 : i32 to vector<8x8xi32>
    %10 = arith.addi %2, %9 : vector<8x8xi32>
    %11 = arith.cmpi eq, %3, %10 : vector<8x8xi32>
    %12 = arith.extui %11 : vector<8x8xi1> to vector<8x8xi32>
    %13 = arith.sitofp %12 : vector<8x8xi32> to vector<8x8xf32>
    %c0_3 = arith.constant 0 : index
    %c0_4 = arith.constant 0 : index
    %c0_5 = arith.constant 0 : index
    %14 = vector.load %arg2[%c0_3, %c0_4, %c0_5] : memref<3x256x256xf32, #tpu.memory_space<vmem>>, vector<1x256x256xf32>
    %15 = vector.shape_cast %14 : vector<1x256x256xf32> to vector<256x256xf32>
    %cst = arith.constant dense<0.000000e+00> : vector<8x256xf32>
    %16 = tpu.matmul %1, %15, %cst {dimension_numbers = #tpu.dot_dimension_numbers<[1], [0], [0], [1], [0, 0, 1, 1], [], []>} : vector<8x256xf32>, vector<256x256xf32>, vector<8x256xf32> -> vector<8x256xf32>
    %c1 = arith.constant 1 : index
    %c0_6 = arith.constant 0 : index
    %c0_7 = arith.constant 0 : index
    %17 = vector.load %arg2[%c1, %c0_6, %c0_7] : memref<3x256x256xf32, #tpu.memory_space<vmem>>, vector<1x256x256xf32>
    %18 = vector.shape_cast %17 : vector<1x256x256xf32> to vector<256x256xf32>
    %cst_8 = arith.constant dense<0.000000e+00> : vector<8x256xf32>
    %19 = tpu.matmul %1, %18, %cst_8 {dimension_numbers = #tpu.dot_dimension_numbers<[1], [0], [0], [1], [0, 0, 1, 1], [], []>} : vector<8x256xf32>, vector<256x256xf32>, vector<8x256xf32> -> vector<8x256xf32>
    %c2 = arith.constant 2 : index
    %c0_9 = arith.constant 0 : index
    %c0_10 = arith.constant 0 : index
    %20 = vector.load %arg2[%c2, %c0_9, %c0_10] : memref<3x256x256xf32, #tpu.memory_space<vmem>>, vector<1x256x256xf32>
    %21 = vector.shape_cast %20 : vector<1x256x256xf32> to vector<256x256xf32>
    %cst_11 = arith.constant dense<0.000000e+00> : vector<8x256xf32>
    %22 = tpu.matmul %1, %21, %cst_11 {dimension_numbers = #tpu.dot_dimension_numbers<[1], [0], [0], [1], [0, 0, 1, 1], [], []>} : vector<8x256xf32>, vector<256x256xf32>, vector<8x256xf32> -> vector<8x256xf32>
    %cst_12 = arith.constant dense<0.000000e+00> : vector<8x256xf32>
    %23 = tpu.matmul %8, %16, %cst_12 {dimension_numbers = #tpu.dot_dimension_numbers<[1], [0], [0], [1], [0, 0, 1, 1], [], []>} : vector<8x8xf32>, vector<8x256xf32>, vector<8x256xf32> -> vector<8x256xf32>
    %24 = arith.addf %19, %23 : vector<8x256xf32>
    %cst_13 = arith.constant dense<0.000000e+00> : vector<8x256xf32>
    %25 = tpu.matmul %13, %22, %cst_13 {dimension_numbers = #tpu.dot_dimension_numbers<[1], [0], [0], [1], [0, 0, 1, 1], [], []>} : vector<8x8xf32>, vector<8x256xf32>, vector<8x256xf32> -> vector<8x256xf32>
    %26 = arith.addf %24, %25 : vector<8x256xf32>
    %c0_14 = arith.constant 0 : index
    %c0_15 = arith.constant 0 : index
    %27 = vector.load %arg3[%c0_14, %c0_15] : memref<1x256xf32, #tpu.memory_space<vmem>>, vector<1x256xf32>
    %28 = vector.broadcast %27 : vector<1x256xf32> to vector<8x256xf32>
    %29 = arith.addf %26, %28 : vector<8x256xf32>
    %cst_16 = arith.constant 0.000000e+00 : f32
    %30 = vector.broadcast %cst_16 : f32 to vector<8x256xf32>
    %31 = arith.maximumf %29, %30 : vector<8x256xf32>
    %c0_17 = arith.constant 0 : index
    %c0_18 = arith.constant 0 : index
    %c0_19 = arith.constant 0 : index
    %32 = vector.load %arg4[%c0_17, %c0_18, %c0_19] : memref<3x256x256xf32, #tpu.memory_space<vmem>>, vector<1x256x256xf32>
    %33 = vector.shape_cast %32 : vector<1x256x256xf32> to vector<256x256xf32>
    %cst_20 = arith.constant dense<0.000000e+00> : vector<8x256xf32>
    %34 = tpu.matmul %31, %33, %cst_20 {dimension_numbers = #tpu.dot_dimension_numbers<[1], [0], [0], [1], [0, 0, 1, 1], [], []>} : vector<8x256xf32>, vector<256x256xf32>, vector<8x256xf32> -> vector<8x256xf32>
    %c1_21 = arith.constant 1 : index
    %c0_22 = arith.constant 0 : index
    %c0_23 = arith.constant 0 : index
    %35 = vector.load %arg4[%c1_21, %c0_22, %c0_23] : memref<3x256x256xf32, #tpu.memory_space<vmem>>, vector<1x256x256xf32>
    %36 = vector.shape_cast %35 : vector<1x256x256xf32> to vector<256x256xf32>
    %cst_24 = arith.constant dense<0.000000e+00> : vector<8x256xf32>
    %37 = tpu.matmul %31, %36, %cst_24 {dimension_numbers = #tpu.dot_dimension_numbers<[1], [0], [0], [1], [0, 0, 1, 1], [], []>} : vector<8x256xf32>, vector<256x256xf32>, vector<8x256xf32> -> vector<8x256xf32>
    %c2_25 = arith.constant 2 : index
    %c0_26 = arith.constant 0 : index
    %c0_27 = arith.constant 0 : index
    %38 = vector.load %arg4[%c2_25, %c0_26, %c0_27] : memref<3x256x256xf32, #tpu.memory_space<vmem>>, vector<1x256x256xf32>
    %39 = vector.shape_cast %38 : vector<1x256x256xf32> to vector<256x256xf32>
    %cst_28 = arith.constant dense<0.000000e+00> : vector<8x256xf32>
    %40 = tpu.matmul %31, %39, %cst_28 {dimension_numbers = #tpu.dot_dimension_numbers<[1], [0], [0], [1], [0, 0, 1, 1], [], []>} : vector<8x256xf32>, vector<256x256xf32>, vector<8x256xf32> -> vector<8x256xf32>
    %cst_29 = arith.constant dense<0.000000e+00> : vector<8x256xf32>
    %41 = tpu.matmul %8, %34, %cst_29 {dimension_numbers = #tpu.dot_dimension_numbers<[1], [0], [0], [1], [0, 0, 1, 1], [], []>} : vector<8x8xf32>, vector<8x256xf32>, vector<8x256xf32> -> vector<8x256xf32>
    %42 = arith.addf %37, %41 : vector<8x256xf32>
    %cst_30 = arith.constant dense<0.000000e+00> : vector<8x256xf32>
    %43 = tpu.matmul %13, %40, %cst_30 {dimension_numbers = #tpu.dot_dimension_numbers<[1], [0], [0], [1], [0, 0, 1, 1], [], []>} : vector<8x8xf32>, vector<8x256xf32>, vector<8x256xf32> -> vector<8x256xf32>
    %44 = arith.addf %42, %43 : vector<8x256xf32>
    %c0_31 = arith.constant 0 : index
    %c0_32 = arith.constant 0 : index
    %45 = vector.load %arg5[%c0_31, %c0_32] : memref<1x256xf32, #tpu.memory_space<vmem>>, vector<1x256xf32>
    %46 = vector.broadcast %45 : vector<1x256xf32> to vector<8x256xf32>
    %47 = arith.addf %44, %46 : vector<8x256xf32>
    %48 = arith.addf %47, %1 : vector<8x256xf32>
    %cst_33 = arith.constant 0.000000e+00 : f32
    %49 = vector.broadcast %cst_33 : f32 to vector<8x256xf32>
    %50 = arith.maximumf %48, %49 : vector<8x256xf32>
    %c0_34 = arith.constant 0 : index
    %c0_35 = arith.constant 0 : index
    %c0_36 = arith.constant 0 : index
    %51 = vector.load %arg6[%c0_34, %c0_35, %c0_36] : memref<1x8x256xf32, #tpu.memory_space<vmem>>, vector<1x8x256xf32>
    %52 = vector.shape_cast %51 : vector<1x8x256xf32> to vector<8x256xf32>
    %53 = vector.shape_cast %50 : vector<8x256xf32> to vector<1x8x256xf32>
    tpu.vector_store %arg6[%c0_34, %c0_35, %c0_36], %53 {strides = array<i32>} : memref<1x8x256xf32, #tpu.memory_space<vmem>>, vector<1x8x256xf32>,
    return
  }
  func.func @transform_0(%arg0: i32) -> (i32, i32, i32) {
    %c0_i32 = arith.constant 0 : i32
    %c0_i32_0 = arith.constant 0 : i32
    %c0_i32_1 = arith.constant 0 : i32
    return %arg0, %c0_i32, %c0_i32_0 : i32, i32, i32
  }
  func.func @transform_1(%arg0: i32) -> (i32, i32, i32) {
    %c0_i32 = arith.constant 0 : i32
    %c0_i32_0 = arith.constant 0 : i32
    %c0_i32_1 = arith.constant 0 : i32
    %c0_i32_2 = arith.constant 0 : i32
    return %c0_i32, %c0_i32_0, %c0_i32_1 : i32, i32, i32
  }
  func.func @transform_2(%arg0: i32) -> (i32, i32) {
    %c0_i32 = arith.constant 0 : i32
    %c0_i32_0 = arith.constant 0 : i32
    %c0_i32_1 = arith.constant 0 : i32
    return %c0_i32, %c0_i32_0 : i32, i32
  }
  func.func @transform_3(%arg0: i32) -> (i32, i32, i32) {
    %c0_i32 = arith.constant 0 : i32
    %c0_i32_0 = arith.constant 0 : i32
    %c0_i32_1 = arith.constant 0 : i32
    %c0_i32_2 = arith.constant 0 : i32
    return %c0_i32, %c0_i32_0, %c0_i32_1 : i32, i32, i32
  }
  func.func @transform_4(%arg0: i32) -> (i32, i32) {
    %c0_i32 = arith.constant 0 : i32
    %c0_i32_0 = arith.constant 0 : i32
    %c0_i32_1 = arith.constant 0 : i32
    return %c0_i32, %c0_i32_0 : i32, i32
  }
  func.func @transform_5(%arg0: i32) -> (i32, i32, i32) {
    %c0_i32 = arith.constant 0 : i32
    %c0_i32_0 = arith.constant 0 : i32
    %c0_i32_1 = arith.constant 0 : i32
    return %arg0, %c0_i32, %c0_i32_0 : i32, i32, i32
  }
}

</mosaic_0001>

<bundles_post_ra>
// kernel: residual_block3d.1
= control target key start
LH: loop header
LB: loop body
LE: loop exit
PB: predicated region body
PF: predicated region fallthrough
CT: control target
= control target key end

     0   :  { %10 = vsyncpa [#allocation3], 0  ;;  %s2106_s18 = smov 0   ;;  %s2811_s0 = inlined_call_operand.vmem [shape: f32[2,8,256], index: 0, kind: input, shape index: {}]   ;;  %s2812_s1 = inlined_call_operand.vmem [shape: f32[3,256,256], index: 1, kind: input, shape index: {}]   ;;  %s2813_s2 = inlined_call_operand.vmem [shape: f32[1,256], index: 2, kind: input, shape index: {}]   ;;  %s2814_s3 = inlined_call_operand.hbm [shape: f32[3,256,256], index: 3, kind: input, shape index: {}]   ;;  %s2815_s4 = inlined_call_operand.vmem [shape: f32[1,256], index: 4, kind: input, shape index: {}]   ;;  %s2816_s5 = inlined_call_operand.vmem [shape: f32[2,8,256], index: 5, kind: output, shape index: {}]  }
   0x1 LB: > { %s2112_s19 = sadd.s32 4294967295, %s2070_s18   ;;  %p1468_p0 = scmp.ge.s32.totalorder %s2070_s18, 1  ;;  %s2070_s18 = sphi %s2106_s18, %s16_s18  }
   0x2   : > { %p157_p1 = scmp.lt.s32.totalorder %s2070_s18, 3  ;;  %s2072_s20 = smov [#allocation2]  }
   0x3   : > { %s175_s21 = sshll.u32 %s2072_s20, 4  ;;  %p2817_p3 = scmp.eq.s32.totalorder %s2112_s19, 0  ;;  %s176_s21 = int_to_ptr.vmem [resolvable:$true] %s175_s21 }
   0x4   : > { %p2116_p2 = pnand %p1468_p0, %p157_p1  ;;  %s2032_s26 = scalar_lea.hbm %s2814_s3, 24576 }
   0x5   : > { %p2033_p6 = scmp.ne.s32.totalorder %s2814_s3, %s2032_s26  ;;  %p2039_p10 = scmp.lt.u32.totalorder %s2032_s26, %s2814_s3 }
   0x6   : > { %s2819_s22 = scalar_select %p2116_p2, 1, 0 }
   0x7   : > { %p2012_p4 = pneg %p2116_p2 }
   0x9   : > { %p2125_p5 = pnand %p2817_p3, %p2012_p4 }
   0xb   : > { %p2034_p7 = pneg %p2125_p5 }
   0xd   : > { %p2035_p8 = pnand %p2034_p7, %p2033_p6 }
   0xf   : > { %p2036_p9 = pneg %p2035_p8 }
  0x11   : > { %p2041_p11 = pnand %p2039_p10, %p2036_p9 }
  0x13   : > { %2044 = shalt.err (!%p2041_p11)
}
  0x14   : > { %s2045_s6 = scalar_lea.vmem %s176_s21, 24576  ;;  %p2053_p1 = scmp.lt.s32.totalorder %s176_s21, %s176_s21 }
  0x15   : > { %p2046_p12 = scmp.ne.s32.totalorder %s176_s21, %s2045_s6  ;;  %p2054_p4 = scmp.lt.s32.totalorder %s2045_s6, %s2045_s6 }
  0x17   : > { %p2048_p13 = pnand %p2046_p12, %p2034_p7  ;;  %p2055_p3 = por %p2054_p4, %p2053_p1 }
  0x19   : > { %p2049_p0 = pneg %p2048_p13 }
  0x1b   : > { %p2056_p2 = pnand %p2055_p3, %p2049_p0 }
  0x1d   : > { %2059 = shalt.err (!%p2056_p2)
}
  0x1e   : > { %s2073_s7 = smov 256   ;;  %s2074_s8 = smov 16  }
  0x1f   : > { %2015 = dma.hbm_to_vmem [thread:$0]  (!%p2125_p5), %s2814_s3, 24576, %s176_s21, [#allocation3], %s2073_s7, %s2073_s7, %s2074_s8  }
  0x20   : > { %p2821_p6 = scmp.ne.s32.totalorder %s2819_s22, 0 }
  0x21   : > { %p2822_p8 = scmp.eq.s32.totalorder (!%p2821_p6), %s2112_s19, 0 }
  0x22   : > { %202 = sbr.rel (%p2821_p6) target bundleno = 1055 (0x41f), region = 40 }
  0x29   : > { %2065 = dma.done.wait (%p2822_p8), [#allocation3], 24576   ;;  %p2823_p7 = pmov %p2822_p8 }
  0x2a   : > { %v255_v0 = vld [vmem:[%s2812_s1 + $0x8] sm:$0xff]  ;;  %v257_v1 = vld [vmem:[%s2812_s1 + $0x18] sm:$0xff]  ;;  %v254_v2 = vld [vmem:[%s2812_s1] sm:$0xff]  ;;  %p230_p2 = scmp.lt.s32.totalorder %s2112_s19, 1  ;;  %vm590_vm1 = vcmask 64512  }
  0x2b   : > { %2067 = vsyncadd (%p2823_p7), [#allocation3], 4294942720  ;;  %v1616_v3 = vpack.c.bf16 %v257_v1, %v255_v0  ;;  %v256_v4 = vld [vmem:[%s2812_s1 + $0x10] sm:$0xff]  ;;  %v1545_v5 = vld [vmem:[%s2812_s1 + $0x408] sm:$0xff] }
  0x2c   : > { %v1547_v6 = vld [vmem:[%s2812_s1 + $0x418] sm:$0xff]  ;;  %v1618_v7 = vpack.c.bf16 %v256_v4, %v254_v2  ;;  %v1544_v9 = vld [vmem:[%s2812_s1 + $0x400] sm:$0xff]  ;;  %v1546_v10 = vld [vmem:[%s2812_s1 + $0x410] sm:$0xff]  ;;  %s2825_s19 = smov (!%p230_p2, %s2112_s19), 1 }
  0x2d   : > { %v1680_v8 = vpack.c.bf16 %v1547_v6, %v1545_v5  ;;  %v259_v11 = vld [vmem:[%s2812_s1 + $0x28] sm:$0xff]  ;;  %1617 = vmatprep.subr.bf16.mxu0 %v1616_v3  ;;  %v1682_v12 = vpack.c.bf16 %v1546_v10, %v1544_v9  ;;  %v261_v13 = vld [vmem:[%s2812_s1 + $0x38] sm:$0xff]  ;;  %v258_v14 = vld [vmem:[%s2812_s1 + $0x20] sm:$0xff]  ;;  %s1614_s20 = sshll.u32 %s2825_s19, 4 }
  0x2e   : > { %v260_v15 = vld [vmem:[%s2812_s1 + $0x30] sm:$0xff]  ;;  %1619 = vmatpush1.bf16.msra.mxu0 %v1618_v7  ;;  %v1620_v16 = vpack.c.bf16 %v261_v13, %v259_v11  ;;  %v1549_v18 = vld [vmem:[%s2812_s1 + $0x428] sm:$0xff]  ;;  %v1551_v19 = vld [vmem:[%s2812_s1 + $0x438] sm:$0xff]  ;;  %s2439_s14 = scalar_lea.vmem %s2811_s0, %s1614_s20  ;;  %s239_s10 = scalar_lea.vmem %s2816_s5, %s1614_s20 }
  0x2f   : > { %1681 = vmatprep.subr.bf16.mxu1 %v1680_v8  ;;  %v1622_v17 = vpack.c.bf16 %v260_v15, %v258_v14  ;;  %v1548_v20 = vld [vmem:[%s2812_s1 + $0x420] sm:$0xff]  ;;  %v1684_v21 = vpack.c.bf16 %v1551_v19, %v1549_v18  ;;  %v1550_v22 = vld [vmem:[%s2812_s1 + $0x430] sm:$0xff]  ;;  %v263_v23 = vld [vmem:[%s2812_s1 + $0x48] sm:$0xff] }
  0x30   : > { %1683 = vmatpush1.bf16.msra.mxu1 %v1682_v12  ;;  %v265_v24 = vld [vmem:[%s2812_s1 + $0x58] sm:$0xff]  ;;  %1621 = vmatprep.subr.bf16.mxu0 %v1620_v16  ;;  %v1686_v25 = vpack.c.bf16 %v1550_v22, %v1548_v20  ;;  %v262_v27 = vld [vmem:[%s2812_s1 + $0x40] sm:$0xff]  ;;  %v264_v28 = vld [vmem:[%s2812_s1 + $0x50] sm:$0xff] }
  0x31   : > { %v1624_v26 = vpack.c.bf16 %v265_v24, %v263_v23  ;;  %v1553_v29 = vld [vmem:[%s2812_s1 + $0x448] sm:$0xff]  ;;  %1685 = vmatprep.subr.bf16.mxu1 %v1684_v21  ;;  %v1555_v30 = vld [vmem:[%s2812_s1 + $0x458] sm:$0xff]  ;;  %v1552_v31 = vld [vmem:[%s2812_s1 + $0x440] sm:$0xff]  ;;  %v1626_v33 = vpack.c.bf16 %v264_v28, %v262_v27 }
  0x32   : > { %v1554_v32 = vld [vmem:[%s2812_s1 + $0x450] sm:$0xff]  ;;  %1623 = vmatpush1.bf16.msra.mxu0 %v1622_v17  ;;  %v1688_v34 = vpack.c.bf16 %v1555_v30, %v1553_v29  ;;  %v267_v35 = vld [vmem:[%s2812_s1 + $0x68] sm:$0xff]  ;;  %v269_v36 = vld [vmem:[%s2812_s1 + $0x78] sm:$0xff] }
  0x33   : > { %v266_v37 = vld [vmem:[%s2812_s1 + $0x60] sm:$0xff]  ;;  %1625 = vmatprep.subr.bf16.mxu0 %v1624_v26  ;;  %v1690_v38 = vpack.c.bf16 %v1554_v32, %v1552_v31  ;;  %v1628_v39 = vpack.c.bf16 %v269_v36, %v267_v35  ;;  %v268_v40 = vld [vmem:[%s2812_s1 + $0x70] sm:$0xff]  ;;  %v1557_v41 = vld [vmem:[%s2812_s1 + $0x468] sm:$0xff] }
  0x34   : > { %1687 = vmatpush1.bf16.msra.mxu1 %v1686_v25  ;;  %v1559_v42 = vld [vmem:[%s2812_s1 + $0x478] sm:$0xff]  ;;  %v1556_v44 = vld [vmem:[%s2812_s1 + $0x460] sm:$0xff]  ;;  %v1558_v45 = vld [vmem:[%s2812_s1 + $0x470] sm:$0xff]  ;;  %v1630_v48 = vpack.c.bf16 %v268_v40, %v266_v37 }
  0x35   : > { %1689 = vmatprep.subr.bf16.mxu1 %v1688_v34  ;;  %v1692_v43 = vpack.c.bf16 %v1559_v42, %v1557_v41  ;;  %v271_v46 = vld [vmem:[%s2812_s1 + $0x88] sm:$0xff]  ;;  %v273_v47 = vld [vmem:[%s2812_s1 + $0x98] sm:$0xff]  ;;  %v1694_v51 = vpack.c.bf16 %v1558_v45, %v1556_v44  ;;  %v270_v53 = vld [vmem:[%s2812_s1 + $0x80] sm:$0xff] }
  0x36   : > { %1627 = vmatpush1.bf16.msra.mxu0 %v1626_v33  ;;  %v1561_v49 = vld [vmem:[%s2812_s1 + $0x488] sm:$0xff]  ;;  %v1563_v50 = vld [vmem:[%s2812_s1 + $0x498] sm:$0xff]  ;;  %v1632_v52 = vpack.c.bf16 %v273_v47, %v271_v46  ;;  %v272_v54 = vld [vmem:[%s2812_s1 + $0x90] sm:$0xff] }
  0x37   : > { %1629 = vmatprep.subr.bf16.mxu0 %v1628_v39  ;;  %v1560_v55 = vld [vmem:[%s2812_s1 + $0x480] sm:$0xff]  ;;  %v1696_v56 = vpack.c.bf16 %v1563_v50, %v1561_v49  ;;  %v1562_v57 = vld [vmem:[%s2812_s1 + $0x490] sm:$0xff]  ;;  %v275_v58 = vld [vmem:[%s2812_s1 + $0xa8] sm:$0xff]  ;;  %v1634_v62 = vpack.c.bf16 %v272_v54, %v270_v53 }
  0x38   : > { %1691 = vmatpush1.bf16.msra.mxu1 %v1690_v38  ;;  %v277_v59 = vld [vmem:[%s2812_s1 + $0xb8] sm:$0xff]  ;;  %v1565_v60 = vld [vmem:[%s2812_s1 + $0x4a8] sm:$0xff]  ;;  %v1698_v63 = vpack.c.bf16 %v1562_v57, %v1560_v55  ;;  %v274_v1 = vld [vmem:[%s2812_s1 + $0xa0] sm:$0xff] }
  0x39   : > { %1693 = vmatprep.subr.bf16.mxu1 %v1692_v43  ;;  %v1567_v61 = vld [vmem:[%s2812_s1 + $0x4b8] sm:$0xff]  ;;  %v1636_v0 = vpack.c.bf16 %v277_v59, %v275_v58  ;;  %v276_v2 = vld [vmem:[%s2812_s1 + $0xb0] sm:$0xff]  ;;  %v1564_v3 = vld [vmem:[%s2812_s1 + $0x4a0] sm:$0xff] }
  0x3a   : > { %1631 = vmatpush1.bf16.msra.mxu0 %v1630_v48  ;;  %v1700_v4 = vpack.c.bf16 %v1567_v61, %v1565_v60  ;;  %v1566_v5 = vld [vmem:[%s2812_s1 + $0x4b0] sm:$0xff]  ;;  %v279_v6 = vld [vmem:[%s2812_s1 + $0xc8] sm:$0xff]  ;;  %v281_v7 = vld [vmem:[%s2812_s1 + $0xd8] sm:$0xff]  ;;  %v1638_v10 = vpack.c.bf16 %v276_v2, %v274_v1 }
  0x3b   : > { %1633 = vmatprep.subr.bf16.mxu0 %v1632_v52  ;;  %v1569_v8 = vld [vmem:[%s2812_s1 + $0x4c8] sm:$0xff]  ;;  %v1571_v9 = vld [vmem:[%s2812_s1 + $0x4d8] sm:$0xff]  ;;  %v1702_v11 = vpack.c.bf16 %v1566_v5, %v1564_v3  ;;  %v1640_v12 = vpack.c.bf16 %v281_v7, %v279_v6  ;;  %v278_v13 = vld [vmem:[%s2812_s1 + $0xc0] sm:$0xff] }
  0x3c   : > { %1695 = vmatpush1.bf16.msra.mxu1 %v1694_v51  ;;  %v280_v14 = vld [vmem:[%s2812_s1 + $0xd0] sm:$0xff]  ;;  %v1568_v15 = vld [vmem:[%s2812_s1 + $0x4c0] sm:$0xff]  ;;  %v1704_v16 = vpack.c.bf16 %v1571_v9, %v1569_v8  ;;  %v283_v18 = vld [vmem:[%s2812_s1 + $0xe8] sm:$0xff] }
  0x3d   : > { %1697 = vmatprep.subr.bf16.mxu1 %v1696_v56  ;;  %v1570_v17 = vld [vmem:[%s2812_s1 + $0x4d0] sm:$0xff]  ;;  %v285_v19 = vld [vmem:[%s2812_s1 + $0xf8] sm:$0xff]  ;;  %v1573_v20 = vld [vmem:[%s2812_s1 + $0x4e8] sm:$0xff]  ;;  %v1642_v22 = vpack.c.bf16 %v280_v14, %v278_v13 }
  0x3e   : > { %1635 = vmatpush1.bf16.msra.mxu0 %v1634_v62  ;;  %v1575_v21 = vld [vmem:[%s2812_s1 + $0x4f8] sm:$0xff]  ;;  %v1706_v23 = vpack.c.bf16 %v1570_v17, %v1568_v15  ;;  %v1644_v24 = vpack.c.bf16 %v285_v19, %v283_v18  ;;  %v282_v25 = vld [vmem:[%s2812_s1 + $0xe0] sm:$0xff]  ;;  %v284_v26 = vld [vmem:[%s2812_s1 + $0xf0] sm:$0xff] }
  0x3f   : > { %1637 = vmatprep.subr.bf16.mxu0 %v1636_v0  ;;  %v1572_v27 = vld [vmem:[%s2812_s1 + $0x4e0] sm:$0xff]  ;;  %v1708_v28 = vpack.c.bf16 %v1575_v21, %v1573_v20  ;;  %v1574_v29 = vld [vmem:[%s2812_s1 + $0x4f0] sm:$0xff]  ;;  %v287_v30 = vld [vmem:[%s2812_s1 + $0x108] sm:$0xff]  ;;  %v1646_v34 = vpack.c.bf16 %v284_v26, %v282_v25 }
  0x40   : > { %1699 = vmatpush1.bf16.msra.mxu1 %v1698_v63  ;;  %v289_v31 = vld [vmem:[%s2812_s1 + $0x118] sm:$0xff]  ;;  %v1577_v32 = vld [vmem:[%s2812_s1 + $0x508] sm:$0xff]  ;;  %v1710_v35 = vpack.c.bf16 %v1574_v29, %v1572_v27  ;;  %v286_v37 = vld [vmem:[%s2812_s1 + $0x100] sm:$0xff] }
  0x41   : > { %1701 = vmatprep.subr.bf16.mxu1 %v1700_v4  ;;  %v1579_v33 = vld [vmem:[%s2812_s1 + $0x518] sm:$0xff]  ;;  %v1648_v36 = vpack.c.bf16 %v289_v31, %v287_v30  ;;  %v288_v38 = vld [vmem:[%s2812_s1 + $0x110] sm:$0xff]  ;;  %v1576_v39 = vld [vmem:[%s2812_s1 + $0x500] sm:$0xff] }
  0x42   : > { %1639 = vmatpush1.bf16.msra.mxu0 %v1638_v10  ;;  %v1712_v40 = vpack.c.bf16 %v1579_v33, %v1577_v32  ;;  %v1578_v41 = vld [vmem:[%s2812_s1 + $0x510] sm:$0xff]  ;;  %v291_v42 = vld [vmem:[%s2812_s1 + $0x128] sm:$0xff]  ;;  %v293_v43 = vld [vmem:[%s2812_s1 + $0x138] sm:$0xff]  ;;  %v1650_v46 = vpack.c.bf16 %v288_v38, %v286_v37 }
  0x43   : > { %1641 = vmatprep.subr.bf16.mxu0 %v1640_v12  ;;  %v1581_v44 = vld [vmem:[%s2812_s1 + $0x528] sm:$0xff]  ;;  %v1583_v45 = vld [vmem:[%s2812_s1 + $0x538] sm:$0xff]  ;;  %v1714_v47 = vpack.c.bf16 %v1578_v41, %v1576_v39  ;;  %v1652_v48 = vpack.c.bf16 %v293_v43, %v291_v42  ;;  %v290_v49 = vld [vmem:[%s2812_s1 + $0x120] sm:$0xff] }
  0x44   : > { %1703 = vmatpush1.bf16.msra.mxu1 %v1702_v11  ;;  %v292_v50 = vld [vmem:[%s2812_s1 + $0x130] sm:$0xff]  ;;  %v1580_v51 = vld [vmem:[%s2812_s1 + $0x520] sm:$0xff]  ;;  %v1716_v52 = vpack.c.bf16 %v1583_v45, %v1581_v44  ;;  %v295_v54 = vld [vmem:[%s2812_s1 + $0x148] sm:$0xff] }
  0x45   : > { %1705 = vmatprep.subr.bf16.mxu1 %v1704_v16  ;;  %v1582_v53 = vld [vmem:[%s2812_s1 + $0x530] sm:$0xff]  ;;  %v297_v55 = vld [vmem:[%s2812_s1 + $0x158] sm:$0xff]  ;;  %v1585_v56 = vld [vmem:[%s2812_s1 + $0x548] sm:$0xff]  ;;  %v1654_v58 = vpack.c.bf16 %v292_v50, %v290_v49 }
  0x46   : > { %1643 = vmatpush1.bf16.msra.mxu0 %v1642_v22  ;;  %v1587_v57 = vld [vmem:[%s2812_s1 + $0x558] sm:$0xff]  ;;  %v1718_v59 = vpack.c.bf16 %v1582_v53, %v1580_v51  ;;  %v1656_v60 = vpack.c.bf16 %v297_v55, %v295_v54  ;;  %v294_v61 = vld [vmem:[%s2812_s1 + $0x140] sm:$0xff]  ;;  %v296_v62 = vld [vmem:[%s2812_s1 + $0x150] sm:$0xff] }
  0x47   : > { %1645 = vmatprep.subr.bf16.mxu0 %v1644_v24  ;;  %v1584_v63 = vld [vmem:[%s2812_s1 + $0x540] sm:$0xff]  ;;  %v1720_v0 = vpack.c.bf16 %v1587_v57, %v1585_v56  ;;  %v1586_v1 = vld [vmem:[%s2812_s1 + $0x550] sm:$0xff]  ;;  %v299_v2 = vld [vmem:[%s2812_s1 + $0x168] sm:$0xff]  ;;  %v1658_v6 = vpack.c.bf16 %v296_v62, %v294_v61 }
  0x48   : > { %1707 = vmatpush1.bf16.msra.mxu1 %v1706_v23  ;;  %v301_v3 = vld [vmem:[%s2812_s1 + $0x178] sm:$0xff]  ;;  %v1589_v4 = vld [vmem:[%s2812_s1 + $0x568] sm:$0xff]  ;;  %v298_v7 = vld [vmem:[%s2812_s1 + $0x160] sm:$0xff]  ;;  %v1722_v8 = vpack.c.bf16 %v1586_v1, %v1584_v63 }
  0x49   : > { %1709 = vmatprep.subr.bf16.mxu1 %v1708_v28  ;;  %v1591_v5 = vld [vmem:[%s2812_s1 + $0x578] sm:$0xff]  ;;  %v1660_v9 = vpack.c.bf16 %v301_v3, %v299_v2  ;;  %v300_v10 = vld [vmem:[%s2812_s1 + $0x170] sm:$0xff]  ;;  %v1588_v11 = vld [vmem:[%s2812_s1 + $0x560] sm:$0xff] }
  0x4a   : > { %1647 = vmatpush1.bf16.msra.mxu0 %v1646_v34  ;;  %v1590_v12 = vld [vmem:[%s2812_s1 + $0x570] sm:$0xff]  ;;  %v1724_v13 = vpack.c.bf16 %v1591_v5, %v1589_v4  ;;  %v303_v14 = vld [vmem:[%s2812_s1 + $0x188] sm:$0xff]  ;;  %v305_v15 = vld [vmem:[%s2812_s1 + $0x198] sm:$0xff]  ;;  %v1662_v19 = vpack.c.bf16 %v300_v10, %v298_v7 }
  0x4b   : > { %1649 = vmatprep.subr.bf16.mxu0 %v1648_v36  ;;  %v2460_v16 = vld [vmem:[%s2439_s14 + $0x8] sm:$0xff]  ;;  %v1595_v18 = vld [vmem:[%s2812_s1 + $0x598] sm:$0xff]  ;;  %v1726_v20 = vpack.c.bf16 %v1590_v12, %v1588_v11  ;;  %v1664_v21 = vpack.c.bf16 %v305_v15, %v303_v14  ;;  %v302_v22 = vld [vmem:[%s2812_s1 + $0x180] sm:$0xff] }
  0x4c   : > { %1711 = vmatpush1.bf16.msra.mxu1 %v1710_v35  ;;  %v1593_v17 = vld [vmem:[%s2812_s1 + $0x588] sm:$0xff]  ;;  %382 = vmatprep.mubr.f32.mxu0 %v2460_v16  ;;  %v304_v23 = vld [vmem:[%s2812_s1 + $0x190] sm:$0xff]  ;;  %v1592_v24 = vld [vmem:[%s2812_s1 + $0x580] sm:$0xff] }
  0x4d   : > { %1713 = vmatprep.subr.bf16.mxu1 %v1712_v40  ;;  %583 = vmatprep.mubr.f32.mxu1 %v2460_v16  ;;  %v1728_v25 = vpack.c.bf16 %v1595_v18, %v1593_v17  ;;  %v1594_v26 = vld [vmem:[%s2812_s1 + $0x590] sm:$0xff]  ;;  %v307_v27 = vld [vmem:[%s2812_s1 + $0x1a8] sm:$0xff]  ;;  %v309_v28 = vld [vmem:[%s2812_s1 + $0x1b8] sm:$0xff]  ;;  %v1666_v31 = vpack.c.bf16 %v304_v23, %v302_v22 }
  0x4e   : > { %1651 = vmatpush1.bf16.msra.mxu0 %v1650_v46  ;;  %v1597_v29 = vld [vmem:[%s2812_s1 + $0x5a8] sm:$0xff]  ;;  %v1599_v30 = vld [vmem:[%s2812_s1 + $0x5b8] sm:$0xff]  ;;  %v1730_v32 = vpack.c.bf16 %v1594_v26, %v1592_v24  ;;  %v1668_v33 = vpack.c.bf16 %v309_v28, %v307_v27  ;;  %v306_v34 = vld [vmem:[%s2812_s1 + $0x1a0] sm:$0xff] }
  0x4f   : > { %1653 = vmatprep.subr.bf16.mxu0 %v1652_v48  ;;  %v308_v35 = vld [vmem:[%s2812_s1 + $0x1b0] sm:$0xff]  ;;  %v1596_v36 = vld [vmem:[%s2812_s1 + $0x5a0] sm:$0xff]  ;;  %v1732_v37 = vpack.c.bf16 %v1599_v30, %v1597_v29  ;;  %v311_v39 = vld [vmem:[%s2812_s1 + $0x1c8] sm:$0xff] }
  0x50   : > { %1715 = vmatpush1.bf16.msra.mxu1 %v1714_v47  ;;  %v1598_v38 = vld [vmem:[%s2812_s1 + $0x5b0] sm:$0xff]  ;;  %v313_v40 = vld [vmem:[%s2812_s1 + $0x1d8] sm:$0xff]  ;;  %v1601_v41 = vld [vmem:[%s2812_s1 + $0x5c8] sm:$0xff]  ;;  %v1670_v43 = vpack.c.bf16 %v308_v35, %v306_v34 }
  0x51   : > { %1717 = vmatprep.subr.bf16.mxu1 %v1716_v52  ;;  %v1603_v42 = vld [vmem:[%s2812_s1 + $0x5d8] sm:$0xff]  ;;  %v1734_v44 = vpack.c.bf16 %v1598_v38, %v1596_v36  ;;  %v1672_v45 = vpack.c.bf16 %v313_v40, %v311_v39  ;;  %v310_v46 = vld [vmem:[%s2812_s1 + $0x1c0] sm:$0xff]  ;;  %v312_v47 = vld [vmem:[%s2812_s1 + $0x1d0] sm:$0xff] }
  0x52   : > { %1655 = vmatpush1.bf16.msra.mxu0 %v1654_v58  ;;  %v1600_v48 = vld [vmem:[%s2812_s1 + $0x5c0] sm:$0xff]  ;;  %v1736_v49 = vpack.c.bf16 %v1603_v42, %v1601_v41  ;;  %v1602_v50 = vld [vmem:[%s2812_s1 + $0x5d0] sm:$0xff]  ;;  %v315_v51 = vld [vmem:[%s2812_s1 + $0x1e8] sm:$0xff]  ;;  %v1674_v55 = vpack.c.bf16 %v312_v47, %v310_v46 }
  0x53   : > { %1657 = vmatprep.subr.bf16.mxu0 %v1656_v60  ;;  %v317_v52 = vld [vmem:[%s2812_s1 + $0x1f8] sm:$0xff]  ;;  %v1605_v53 = vld [vmem:[%s2812_s1 + $0x5e8] sm:$0xff]  ;;  %v1738_v56 = vpack.c.bf16 %v1602_v50, %v1600_v48  ;;  %v314_v58 = vld [vmem:[%s2812_s1 + $0x1e0] sm:$0xff] }
  0x54   : > { %1719 = vmatpush1.bf16.msra.mxu1 %v1718_v59  ;;  %v1607_v54 = vld [vmem:[%s2812_s1 + $0x5f8] sm:$0xff]  ;;  %v1676_v57 = vpack.c.bf16 %v317_v52, %v315_v51  ;;  %v316_v59 = vld [vmem:[%s2812_s1 + $0x1f0] sm:$0xff]  ;;  %v1604_v60 = vld [vmem:[%s2812_s1 + $0x5e0] sm:$0xff] }
  0x55   : > { %1721 = vmatprep.subr.bf16.mxu1 %v1720_v0  ;;  %v1740_v61 = vpack.c.bf16 %v1607_v54, %v1605_v53  ;;  %v1606_v62 = vld [vmem:[%s2812_s1 + $0x5f0] sm:$0xff]  ;;  %v1481_v63 = vld [vmem:[%s2812_s1 + $0x208] sm:$0xff]  ;;  %v1483_v0 = vld [vmem:[%s2812_s1 + $0x218] sm:$0xff]  ;;  %v1678_v1 = vpack.c.bf16 %v316_v59, %v314_v58 }
  0x56   : > { %1659 = vmatpush1.bf16.msra.mxu0 %v1658_v6  ;;  %v1742_v2 = vpack.c.bf16 %v1606_v62, %v1604_v60  ;;  %v1744_v3 = vpack.c.bf16 %v1483_v0, %v1481_v63  ;;  %v1480_v4 = vld [vmem:[%s2812_s1 + $0x200] sm:$0xff]  ;;  %v1482_v5 = vld [vmem:[%s2812_s1 + $0x210] sm:$0xff]  ;;  %v1485_v6 = vld [vmem:[%s2812_s1 + $0x228] sm:$0xff] }
  0x57   : > { %1661 = vmatprep.subr.bf16.mxu0 %v1660_v9  ;;  %v1487_v7 = vld [vmem:[%s2812_s1 + $0x238] sm:$0xff]  ;;  %v1746_v9 = vpack.c.bf16 %v1482_v5, %v1480_v4  ;;  %v1484_v11 = vld [vmem:[%s2812_s1 + $0x220] sm:$0xff]  ;;  %v1486_v12 = vld [vmem:[%s2812_s1 + $0x230] sm:$0xff] }
  0x58   : > { %1723 = vmatpush1.bf16.msra.mxu1 %v1722_v8  ;;  %v2573_v8 = vld [vmem:[%s2439_s14] sm:$0xff]  ;;  %v1748_v10 = vpack.c.bf16 %v1487_v7, %v1485_v6  ;;  %v1491_v14 = vld [vmem:[%s2812_s1 + $0x258] sm:$0xff]  ;;  %v1750_v15 = vpack.c.bf16 %v1486_v12, %v1484_v11  ;;  %v1498_v30 = vld [vmem:[%s2812_s1 + $0x290] sm:$0xff] }
  0x59   : > { %1725 = vmatprep.subr.bf16.mxu1 %v1724_v13  ;;  %v1489_v13 = vld [vmem:[%s2812_s1 + $0x248] sm:$0xff]  ;;  %v1488_v18 = vld [vmem:[%s2812_s1 + $0x240] sm:$0xff]  ;;  %v1499_v26 = vld [vmem:[%s2812_s1 + $0x298] sm:$0xff] }
  0x5a   : > { %1663 = vmatpush1.bf16.msra.mxu0 %v1662_v19  ;;  %v1752_v17 = vpack.c.bf16 %v1491_v14, %v1489_v13  ;;  %v1490_v19 = vld [vmem:[%s2812_s1 + $0x250] sm:$0xff]  ;;  %v1492_v24 = vld [vmem:[%s2812_s1 + $0x260] sm:$0xff]  ;;  %v1507_v38 = vld [vmem:[%s2812_s1 + $0x2d8] sm:$0xff] }
  0x5b   : > { %1665 = vmatprep.subr.bf16.mxu0 %v1664_v21  ;;  %v1495_v21 = vld [vmem:[%s2812_s1 + $0x278] sm:$0xff]  ;;  %v1754_v22 = vpack.c.bf16 %v1490_v19, %v1488_v18  ;;  %v1496_v29 = vld [vmem:[%s2812_s1 + $0x280] sm:$0xff]  ;;  %v1502_v36 = vld [vmem:[%s2812_s1 + $0x2b0] sm:$0xff] }
  0x5c   : > { %1727 = vmatpush1.bf16.msra.mxu1 %v1726_v20  ;;  %v1493_v20 = vld [vmem:[%s2812_s1 + $0x268] sm:$0xff]  ;;  %v1500_v35 = vld [vmem:[%s2812_s1 + $0x2a0] sm:$0xff]  ;;  %v1506_v42 = vld [vmem:[%s2812_s1 + $0x2d0] sm:$0xff] }
  0x5d   : > { %1729 = vmatprep.subr.bf16.mxu1 %v1728_v25  ;;  %v1756_v23 = vpack.c.bf16 %v1495_v21, %v1493_v20  ;;  %v1497_v25 = vld [vmem:[%s2812_s1 + $0x288] sm:$0xff]  ;;  %v1766_v39 = vpack.c.bf16 %v1502_v36, %v1500_v35  ;;  %v1504_v41 = vld [vmem:[%s2812_s1 + $0x2c0] sm:$0xff]  ;;  %v1510_v48 = vld [vmem:[%s2812_s1 + $0x2f0] sm:$0xff]  ;;  %v2075_v35 = vmov 0.0   ;;  %v242_v36 = vlaneseq }
  0x5e   : > { %1667 = vmatpush1.bf16.msra.mxu0 %v1666_v31  ;;  %v1760_v28 = vpack.c.bf16 %v1499_v26, %v1497_v25  ;;  %v1501_v31 = vld [vmem:[%s2812_s1 + $0x2a8] sm:$0xff]  ;;  %v1508_v47 = vld [vmem:[%s2812_s1 + $0x2e0] sm:$0xff]  ;;  %v1515_v50 = vld [vmem:[%s2812_s1 + $0x318] sm:$0xff] }
  0x5f   : > { %1669 = vmatprep.subr.bf16.mxu0 %v1668_v33  ;;  %v1762_v33 = vpack.c.bf16 %v1498_v30, %v1496_v29  ;;  %v1774_v51 = vpack.c.bf16 %v1510_v48, %v1508_v47  ;;  %v1512_v53 = vld [vmem:[%s2812_s1 + $0x300] sm:$0xff]  ;;  %v1514_v54 = vld [vmem:[%s2812_s1 + $0x310] sm:$0xff]  ;;  %v1523_v62 = vld [vmem:[%s2812_s1 + $0x358] sm:$0xff] }
  0x60   : > { %1731 = vmatpush1.bf16.msra.mxu1 %v1730_v32  ;;  %v1503_v32 = vld [vmem:[%s2812_s1 + $0x2b8] sm:$0xff]  ;;  %v1516_v59 = vld [vmem:[%s2812_s1 + $0x320] sm:$0xff]  ;;  %v1518_v60 = vld [vmem:[%s2812_s1 + $0x330] sm:$0xff] }
  0x61   : > { %1733 = vmatprep.subr.bf16.mxu1 %v1732_v37  ;;  %v1764_v34 = vpack.c.bf16 %v1503_v32, %v1501_v31  ;;  %v1505_v37 = vld [vmem:[%s2812_s1 + $0x2c8] sm:$0xff]  ;;  %v1782_v63 = vpack.c.bf16 %v1518_v60, %v1516_v59  ;;  %v1527_v4 = vld [vmem:[%s2812_s1 + $0x378] sm:$0xff]  ;;  %v1524_v7 = vld [vmem:[%s2812_s1 + $0x360] sm:$0xff] }
  0x62   : > { %1671 = vmatpush1.bf16.msra.mxu0 %v1670_v43  ;;  %v1768_v40 = vpack.c.bf16 %v1507_v38, %v1505_v37  ;;  %v1509_v43 = vld [vmem:[%s2812_s1 + $0x2e8] sm:$0xff]  ;;  %v1531_v11 = vld [vmem:[%s2812_s1 + $0x398] sm:$0xff]  ;;  %v1528_v14 = vld [vmem:[%s2812_s1 + $0x380] sm:$0xff]  ;;  %v2755_v37 = vshrl.u32 %v242_v36, 7  ;;  %v245_v38 = vand.u32 127, %v242_v36 }
  0x63   : > { %1673 = vmatprep.subr.bf16.mxu0 %v1672_v45  ;;  %v1770_v45 = vpack.c.bf16 %v1506_v42, %v1504_v41  ;;  %v1535_v18 = vld [vmem:[%s2812_s1 + $0x3b8] sm:$0xff]  ;;  %v1532_v21 = vld [vmem:[%s2812_s1 + $0x3a0] sm:$0xff]  ;;  %v1541_v29 = vld [vmem:[%s2812_s1 + $0x3e8] sm:$0xff] }
  0x64   : > { %1735 = vmatpush1.bf16.msra.mxu1 %v1734_v44  ;;  %v1511_v44 = vld [vmem:[%s2812_s1 + $0x2f8] sm:$0xff]  ;;  %v1536_v26 = vld [vmem:[%s2812_s1 + $0x3c0] sm:$0xff]  ;;  %v829_v41 = vld [vmem:[#allocation2 + $0x8] sm:$0xff] }
  0x65   : > { %1737 = vmatprep.subr.bf16.mxu1 %v1736_v49  ;;  %v1772_v46 = vpack.c.bf16 %v1511_v44, %v1509_v43  ;;  %v1513_v49 = vld [vmem:[%s2812_s1 + $0x308] sm:$0xff]  ;;  %v1543_v30 = vld [vmem:[%s2812_s1 + $0x3f8] sm:$0xff]  ;;  %v1540_v32 = vld [vmem:[%s2812_s1 + $0x3e0] sm:$0xff] }
  0x66   : > { %1675 = vmatpush1.bf16.msra.mxu0 %v1674_v55  ;;  %v1776_v52 = vpack.c.bf16 %v1515_v50, %v1513_v49  ;;  %v1517_v55 = vld [vmem:[%s2812_s1 + $0x328] sm:$0xff]  ;;  %v1804_v31 = vpack.c.bf16 %v1543_v30, %v1541_v29  ;;  %v831_v42 = vld [vmem:[#allocation2 + $0x18] sm:$0xff]  ;;  %v828_v48 = vld [vmem:[#allocation2] sm:$0xff] }
  0x67   : > { %1677 = vmatprep.subr.bf16.mxu0 %v1676_v57  ;;  %v1778_v57 = vpack.c.bf16 %v1514_v54, %v1512_v53  ;;  %v1808_v47 = vpack.c.bf16 %v831_v42, %v829_v41  ;;  %v830_v49 = vld [vmem:[#allocation2 + $0x10] sm:$0xff]  ;;  %v833_v50 = vld [vmem:[#allocation2 + $0x28] sm:$0xff]  ;;  %v864_v42 = vld [vmem:[#allocation2 + $0x120] sm:$0xff] }
  0x68   : > { %1739 = vmatpush1.bf16.msra.mxu1 %v1738_v56  ;;  %v1519_v56 = vld [vmem:[%s2812_s1 + $0x338] sm:$0xff]  ;;  %v1810_v53 = vpack.c.bf16 %v830_v49, %v828_v48  ;;  %v858_v29 = vld [vmem:[#allocation2 + $0xf0] sm:$0xff]  ;;  %v861_v30 = vld [vmem:[#allocation2 + $0x108] sm:$0xff] }
  0x69   : > { %1741 = vmatprep.subr.bf16.mxu1 %v1740_v61  ;;  %v1780_v58 = vpack.c.bf16 %v1519_v56, %v1517_v55  ;;  %v1521_v61 = vld [vmem:[%s2812_s1 + $0x348] sm:$0xff]  ;;  %v832_v55 = vld [vmem:[#allocation2 + $0x20] sm:$0xff]  ;;  %v834_v56 = vld [vmem:[#allocation2 + $0x30] sm:$0xff] }
  0x6a   : > { %1679 = vmatpush1.bf16.msra.mxu0 %v1678_v1  ;;  %v1784_v0 = vpack.c.bf16 %v1523_v62, %v1521_v61  ;;  %v1520_v1 = vld [vmem:[%s2812_s1 + $0x340] sm:$0xff]  ;;  %v1814_v59 = vpack.c.bf16 %v834_v56, %v832_v55  ;;  %v838_v62 = vld [vmem:[#allocation2 + $0x50] sm:$0xff] }
  0x6b   : > { %1745 = vmatprep.subr.bf16.mxu0 %v1744_v3  ;;  %v1525_v3 = vld [vmem:[%s2812_s1 + $0x368] sm:$0xff]  ;;  %v836_v61 = vld [vmem:[#allocation2 + $0x40] sm:$0xff]  ;;  %v862_v36 = vld [vmem:[#allocation2 + $0x110] sm:$0xff] }
  0x6c   : > { %1743 = vmatpush1.bf16.msra.mxu1 %v1742_v2  ;;  %v1522_v2 = vld [vmem:[%s2812_s1 + $0x350] sm:$0xff]  ;;  %v1788_v6 = vpack.c.bf16 %v1527_v4, %v1525_v3  ;;  %v840_v3 = vld [vmem:[#allocation2 + $0x60] sm:$0xff] }
  0x6d   : > { %383 = vmatmul.mubr.f32.vlgmr.msra.gmra.mrb[0].mxu0 %v2573_v8  ;;  %v1786_v5 = vpack.c.bf16 %v1522_v2, %v1520_v1  ;;  %v1818_v1 = vpack.c.bf16 %v838_v62, %v836_v61  ;;  %v842_v4 = vld [vmem:[#allocation2 + $0x70] sm:$0xff]  ;;  %v868_v48 = vld [vmem:[#allocation2 + $0x140] sm:$0xff] }
  0x6e   : > { %1747 = vmatpush1.bf16.msra.mxu0 %v1746_v9  ;;  %729 = vmatprep.mubr.f32.mxu0 %v2460_v16  ;;  %v1494_v16 = vld [vmem:[%s2812_s1 + $0x270] sm:$0xff]  ;;  %v872_v55 = vld [vmem:[#allocation2 + $0x160] sm:$0xff] }
  0x6f   : > { %584 = vmatmul.mubr.f32.vlgmr.msra.gmra.mrb[0].mxu1 %v2573_v8  ;;  %1749 = vmatprep.subr.bf16.mxu0 %v1748_v10  ;;  %v1758_v27 = vpack.c.bf16 %v1494_v16, %v1492_v24  ;;  %v1526_v9 = vld [vmem:[%s2812_s1 + $0x370] sm:$0xff]  ;;  %v1529_v10 = vld [vmem:[%s2812_s1 + $0x388] sm:$0xff]  ;;  %v1539_v24 = vld [vmem:[%s2812_s1 + $0x3d8] sm:$0xff] }
  0x70   : > { %v1790_v12 = vpack.c.bf16 %v1526_v9, %v1524_v7  ;;  %v1792_v13 = vpack.c.bf16 %v1531_v11, %v1529_v10  ;;  %658 = vmatprep.mubr.f32.mxu1 %v2075_v35  ;;  %v1822_v7 = vpack.c.bf16 %v842_v4, %v840_v3  ;;  %v844_v10 = vld [vmem:[#allocation2 + $0x80] sm:$0xff]  ;;  %v846_v11 = vld [vmem:[#allocation2 + $0x90] sm:$0xff] }
  0x71   : > { %v870_v49 = vld [vmem:[#allocation2 + $0x150] sm:$0xff]  ;;  %v876_v61 = vld [vmem:[#allocation2 + $0x180] sm:$0xff] }
  0x72   : > { %1751 = vmatpush1.bf16.msra.mxu0 %v1750_v15  ;;  %v1530_v15 = vld [vmem:[%s2812_s1 + $0x390] sm:$0xff]  ;;  %v880_v3 = vld [vmem:[#allocation2 + $0x1a0] sm:$0xff] }
  0x73   : > { %1753 = vmatprep.subr.bf16.mxu0 %v1752_v17  ;;  %v1533_v17 = vld [vmem:[%s2812_s1 + $0x3a8] sm:$0xff]  ;;  %v1794_v19 = vpack.c.bf16 %v1530_v15, %v1528_v14  ;;  %v1826_v14 = vpack.c.bf16 %v846_v11, %v844_v10  ;;  %v874_v56 = vld [vmem:[#allocation2 + $0x170] sm:$0xff]  ;;  %v887_v10 = vld [vmem:[#allocation2 + $0x1d8] sm:$0xff] }
  0x74   : > { %v1796_v20 = vpack.c.bf16 %v1535_v18, %v1533_v17  ;;  %v848_v17 = vld [vmem:[#allocation2 + $0xa0] sm:$0xff]  ;;  %v850_v18 = vld [vmem:[#allocation2 + $0xb0] sm:$0xff] }
  0x75   : > { %v878_v62 = vld [vmem:[#allocation2 + $0x190] sm:$0xff] }
  0x76   : > { %1755 = vmatpush1.bf16.msra.mxu0 %v1754_v22  ;;  %v1534_v22 = vld [vmem:[%s2812_s1 + $0x3b0] sm:$0xff] }
  0x77   : > { %1757 = vmatprep.subr.bf16.mxu0 %v1756_v23  ;;  %v1537_v23 = vld [vmem:[%s2812_s1 + $0x3c8] sm:$0xff]  ;;  %v1798_v16 = vpack.c.bf16 %v1534_v22, %v1532_v21  ;;  %v1830_v21 = vpack.c.bf16 %v850_v18, %v848_v17  ;;  %v882_v4 = vld [vmem:[#allocation2 + $0x1b0] sm:$0xff]  ;;  %v891_v17 = vld [vmem:[#allocation2 + $0x1f8] sm:$0xff] }
  0x78   : > { %v1800_v25 = vpack.c.bf16 %v1539_v24, %v1537_v23  ;;  %v852_v23 = vld [vmem:[#allocation2 + $0xc0] sm:$0xff]  ;;  %v854_v24 = vld [vmem:[#allocation2 + $0xd0] sm:$0xff] }
  0x7a   : > { %1759 = vmatpush1.bf16.msra.mxu0 %v1758_v27  ;;  %v1538_v27 = vld [vmem:[%s2812_s1 + $0x3d0] sm:$0xff] }
  0x7b   : > { %1761 = vmatprep.subr.bf16.mxu0 %v1760_v28  ;;  %v1802_v28 = vpack.c.bf16 %v1538_v27, %v1536_v26  ;;  %v1834_v26 = vpack.c.bf16 %v854_v24, %v852_v23  ;;  %v1032_v23 = vld [vmem:[#allocation2 + $0x418] sm:$0xff] }
  0x7e   : > { %1763 = vmatpush1.bf16.msra.mxu0 %v1762_v33  ;;  %v1542_v33 = vld [vmem:[%s2812_s1 + $0x3f0] sm:$0xff] }
  0x7f   : > { %1765 = vmatprep.subr.bf16.mxu0 %v1764_v34  ;;  %v1806_v34 = vpack.c.bf16 %v1542_v33, %v1540_v32 }
  0x82   : > { %1767 = vmatpush1.bf16.msra.mxu0 %v1766_v39  ;;  %v1477_v39 = vadd.s32 4294967295, %v2755_v37 }
  0x83   : > { %1769 = vmatprep.subr.bf16.mxu0 %v1768_v40  ;;  %v250_v40 = vadd.s32 1, %v2755_v37 }
  0x84   : > { %vm247_vm0 = vcmp.eq.s32.totalorder %v245_v38, %v1477_v39  ;;  %v867_v39 = vld [vmem:[#allocation2 + $0x138] sm:$0xff] }
  0x85   : > { %vm251_vm2 = vcmp.eq.s32.totalorder %v245_v38, %v250_v40  ;;  %v865_v38 = vld [vmem:[#allocation2 + $0x128] sm:$0xff] }
  0x86   : > { %1771 = vmatpush1.bf16.msra.mxu0 %v1770_v45  ;;  %v1844_v41 = vpack.c.bf16 %v867_v39, %v865_v38 }
  0x87   : > { %1773 = vmatprep.subr.bf16.mxu0 %v1772_v46  ;;  %v2760_v46 = vsel %vm247_vm0, 1.0, %v2075_v35 }
  0x8a   : > { %1775 = vmatpush1.bf16.msra.mxu0 %v1774_v51  ;;  %v835_v51 = vld [vmem:[#allocation2 + $0x38] sm:$0xff] }
  0x8b   : > { %1777 = vmatprep.subr.bf16.mxu0 %v1776_v52  ;;  %v2766_v52 = vsel %vm251_vm2, 1.0, %v2075_v35  ;;  %v1812_v54 = vpack.c.bf16 %v835_v51, %v833_v50  ;;  %v873_v50 = vld [vmem:[#allocation2 + $0x168] sm:$0xff]  ;;  %v875_v51 = vld [vmem:[#allocation2 + $0x178] sm:$0xff] }
  0x8e   : > { %1779 = vmatpush1.bf16.msra.mxu0 %v1778_v57  ;;  %v837_v57 = vld [vmem:[#allocation2 + $0x48] sm:$0xff] }
  0x8f   : > { %1781 = vmatprep.subr.bf16.mxu0 %v1780_v58  ;;  %v839_v58 = vld [vmem:[#allocation2 + $0x58] sm:$0xff] }
  0x90   : > { %v1816_v60 = vpack.c.bf16 %v839_v58, %v837_v57  ;;  %v877_v57 = vld [vmem:[#allocation2 + $0x188] sm:$0xff]  ;;  %v879_v58 = vld [vmem:[#allocation2 + $0x198] sm:$0xff] }
  0x92   : > { %1783 = vmatpush1.bf16.msra.mxu0 %v1782_v63  ;;  %v841_v63 = vld [vmem:[#allocation2 + $0x68] sm:$0xff] }
  0x93   : > { %1785 = vmatprep.subr.bf16.mxu0 %v1784_v0  ;;  %v843_v0 = vld [vmem:[#allocation2 + $0x78] sm:$0xff] }
  0x94   : > { %v1820_v2 = vpack.c.bf16 %v843_v0, %v841_v63  ;;  %v1858_v63 = vpack.c.bf16 %v878_v62, %v876_v61  ;;  %v881_v0 = vld [vmem:[#allocation2 + $0x1a8] sm:$0xff]  ;;  %v1041_v62 = vld [vmem:[#allocation2 + $0x460] sm:$0xff] }
  0x96   : > { %1787 = vmatpush1.bf16.msra.mxu0 %v1786_v5  ;;  %v845_v5 = vld [vmem:[#allocation2 + $0x88] sm:$0xff] }
  0x97   : > { %1789 = vmatprep.subr.bf16.mxu0 %v1788_v6  ;;  %v847_v6 = vld [vmem:[#allocation2 + $0x98] sm:$0xff] }
  0x98   : > { %v1824_v9 = vpack.c.bf16 %v847_v6, %v845_v5  ;;  %v1862_v5 = vpack.c.bf16 %v882_v4, %v880_v3  ;;  %v1045_v4 = vld [vmem:[#allocation2 + $0x480] sm:$0xff] }
  0x9a   : > { %1791 = vmatpush1.bf16.msra.mxu0 %v1790_v12  ;;  %v849_v12 = vld [vmem:[#allocation2 + $0xa8] sm:$0xff] }
  0x9b   : > { %1793 = vmatprep.subr.bf16.mxu0 %v1792_v13  ;;  %v851_v13 = vld [vmem:[#allocation2 + $0xb8] sm:$0xff] }
  0x9c   : > { %v1828_v15 = vpack.c.bf16 %v851_v13, %v849_v12  ;;  %v884_v12 = vld [vmem:[#allocation2 + $0x1c0] sm:$0xff]  ;;  %v886_v13 = vld [vmem:[#allocation2 + $0x1d0] sm:$0xff] }
  0x9e   : > { %1795 = vmatpush1.bf16.msra.mxu0 %v1794_v19  ;;  %v853_v19 = vld [vmem:[#allocation2 + $0xc8] sm:$0xff] }
  0x9f   : > { %1797 = vmatprep.subr.bf16.mxu0 %v1796_v20  ;;  %v855_v20 = vld [vmem:[#allocation2 + $0xd8] sm:$0xff] }
  0xa0   : > { %v1832_v22 = vpack.c.bf16 %v855_v20, %v853_v19  ;;  %v888_v19 = vld [vmem:[#allocation2 + $0x1e0] sm:$0xff]  ;;  %v890_v20 = vld [vmem:[#allocation2 + $0x1f0] sm:$0xff] }
  0xa2   : > { %1799 = vmatpush1.bf16.msra.mxu0 %v1798_v16  ;;  %v857_v16 = vld [vmem:[#allocation2 + $0xe8] sm:$0xff] }
  0xa3   : > { %1801 = vmatprep.subr.bf16.mxu0 %v1800_v25  ;;  %v859_v25 = vld [vmem:[#allocation2 + $0xf8] sm:$0xff] }
  0xa4   : > { %v1836_v27 = vpack.c.bf16 %v859_v25, %v857_v16  ;;  %v816_v16 = vsub.s32 0, %v2755_v37 }
  0xa6   : > { %1803 = vmatpush1.bf16.msra.mxu0 %v1802_v28  ;;  %v856_v28 = vld [vmem:[#allocation2 + $0xe0] sm:$0xff] }
  0xa7   : > { %1805 = vmatprep.subr.bf16.mxu0 %v1804_v31  ;;  %v863_v31 = vld [vmem:[#allocation2 + $0x118] sm:$0xff]  ;;  %v1838_v32 = vpack.c.bf16 %v858_v29, %v856_v28 }
  0xa8   : > { %v1840_v33 = vpack.c.bf16 %v863_v31, %v861_v30 }
  0xaa   : > { %1807 = vmatpush1.bf16.msra.mxu0 %v1806_v34  ;;  %v860_v34 = vld [vmem:[#allocation2 + $0x100] sm:$0xff] }
  0xab   : > { %v1842_v40 = vpack.c.bf16 %v862_v36, %v860_v34 }
  0xad   : > { %730 = vmatmul.mubr.f32.vlgmr.msra.gmra.mrb[2].mxu0 %v2573_v8 }
  0xae   : > { %1228 = vmatprep.mubr.f32.mxu0 %v2075_v35 }
 0x140   : > { %v384_v43 = vpop.f32.mrb[0].mxu0 }
 0x141   : > { %v386_v44 = vpop.f32.mrb[1].mxu0 }
 0x142   : > { %v585_v45 = vpop.f32.mrb[0].mxu1  ;;  %594 = vmatprep.subr.mxu1 %v386_v44  ;;  %v869_v44 = vld [vmem:[#allocation2 + $0x148] sm:$0xff] }
 0x143   : > { %v587_v8 = vpop.f32.mrb[1].mxu1  ;;  %595 = vmatpush1.msra.mxu1 %v384_v43  ;;  %v866_v43 = vld [vmem:[#allocation2 + $0x130] sm:$0xff] }
 0x144   : > { %1608 = vmatmul.mubr.msk.f32.vlgmr.msra.gmra.mrb[2].mxu1 %vm590_vm1, %v2760_v46  ;;  %739 = vmatprep.subr.mxu1 %v587_v8  ;;  %v1846_v8 = vpack.c.bf16 %v866_v43, %v864_v42  ;;  %v1034_v43 = vld [vmem:[#allocation2 + $0x428] sm:$0xff] }
 0x145   : > { %740 = vmatpush1.msra.mxu1 %v585_v45  ;;  %803 = vmatprep.mubr.f32.mxu1 %v2075_v35  ;;  %v871_v45 = vld [vmem:[#allocation2 + $0x158] sm:$0xff] }
 0x146   : > { %1809 = vmatprep.subr.bf16.mxu1 %v1808_v47  ;;  %v1848_v47 = vpack.c.bf16 %v871_v45, %v869_v44  ;;  %v1036_v44 = vld [vmem:[#allocation2 + $0x438] sm:$0xff] }
 0x148   : > { %1609 = vmatmul.mubr.msk.f32.vlgmr.msra.gmra.mrb[4].mxu1 %vm590_vm1, %v2766_v52 }
 0x149   : > { %1811 = vmatpush1.bf16.msra.mxu1 %v1810_v53  ;;  %v1850_v53 = vpack.c.bf16 %v870_v49, %v868_v48  ;;  %v1876_v48 = vpack.c.bf16 %v1036_v44, %v1034_v43  ;;  %v1033_v49 = vld [vmem:[#allocation2 + $0x420] sm:$0xff] }
 0x14a   : > { %1813 = vmatprep.subr.bf16.mxu1 %v1812_v54  ;;  %v1852_v54 = vpack.c.bf16 %v875_v51, %v873_v50  ;;  %v1035_v50 = vld [vmem:[#allocation2 + $0x430] sm:$0xff]  ;;  %v1038_v51 = vld [vmem:[#allocation2 + $0x448] sm:$0xff] }
 0x14d   : > { %1815 = vmatpush1.bf16.msra.mxu1 %v1814_v59  ;;  %v1854_v59 = vpack.c.bf16 %v874_v56, %v872_v55  ;;  %v1037_v56 = vld [vmem:[#allocation2 + $0x440] sm:$0xff] }
 0x14e   : > { %1817 = vmatprep.subr.bf16.mxu1 %v1816_v60  ;;  %v1856_v60 = vpack.c.bf16 %v879_v58, %v877_v57  ;;  %v1039_v57 = vld [vmem:[#allocation2 + $0x450] sm:$0xff]  ;;  %v1042_v58 = vld [vmem:[#allocation2 + $0x468] sm:$0xff] }
 0x151   : > { %1819 = vmatpush1.bf16.msra.mxu1 %v1818_v1  ;;  %v883_v1 = vld [vmem:[#allocation2 + $0x1b8] sm:$0xff] }
 0x152   : > { %1821 = vmatprep.subr.bf16.mxu1 %v1820_v2  ;;  %v1860_v2 = vpack.c.bf16 %v883_v1, %v881_v0  ;;  %v1046_v0 = vld [vmem:[#allocation2 + $0x488] sm:$0xff]  ;;  %v1048_v1 = vld [vmem:[#allocation2 + $0x498] sm:$0xff] }
 0x153   : > { %v1888_v3 = vpack.c.bf16 %v1048_v1, %v1046_v0 }
 0x155   : > { %1823 = vmatpush1.bf16.msra.mxu1 %v1822_v7 }
 0x156   : > { %1825 = vmatprep.subr.bf16.mxu1 %v1824_v9  ;;  %v885_v9 = vld [vmem:[#allocation2 + $0x1c8] sm:$0xff] }
 0x157   : > { %v1864_v11 = vpack.c.bf16 %v887_v10, %v885_v9 }
 0x159   : > { %1827 = vmatpush1.bf16.msra.mxu1 %v1826_v14  ;;  %v1866_v14 = vpack.c.bf16 %v886_v13, %v884_v12  ;;  %v1051_v12 = vld [vmem:[#allocation2 + $0x4b0] sm:$0xff]  ;;  %v1054_v13 = vld [vmem:[#allocation2 + $0x4c8] sm:$0xff] }
 0x15a   : > { %1829 = vmatprep.subr.bf16.mxu1 %v1828_v15  ;;  %v889_v15 = vld [vmem:[#allocation2 + $0x1e8] sm:$0xff] }
 0x15b   : > { %v1868_v18 = vpack.c.bf16 %v891_v17, %v889_v15 }
 0x15d   : > { %1831 = vmatpush1.bf16.msra.mxu1 %v1830_v21  ;;  %v1870_v21 = vpack.c.bf16 %v890_v20, %v888_v19  ;;  %v1055_v19 = vld [vmem:[#allocation2 + $0x4d0] sm:$0xff]  ;;  %v1058_v20 = vld [vmem:[#allocation2 + $0x4e8] sm:$0xff] }
 0x15e   : > { %1833 = vmatprep.subr.bf16.mxu1 %v1832_v22  ;;  %v1030_v22 = vld [vmem:[#allocation2 + $0x408] sm:$0xff] }
 0x15f   : > { %v1872_v24 = vpack.c.bf16 %v1032_v23, %v1030_v22 }
 0x161   : > { %1835 = vmatpush1.bf16.msra.mxu1 %v1834_v26  ;;  %v812_v26 = vld [vmem:[%s2813_s2] sm:$0x3] }
 0x162   : > { %1837 = vmatprep.subr.bf16.mxu1 %v1836_v27  ;;  %v820_v27 = vsub.s32 1, %v2755_v37  ;;  %v817_v31 = vrot.slane %v812_v26, %v816_v16 }
 0x165   : > { %1839 = vmatpush1.bf16.msra.mxu1 %v1838_v32 }
 0x166   : > { %1841 = vmatprep.subr.bf16.mxu1 %v1840_v33  ;;  %v821_v33 = vrot.slane %v812_v26, %v820_v27  ;;  %v1062_v26 = vld [vmem:[#allocation2 + $0x508] sm:$0xff] }
 0x169   : > { %1843 = vmatpush1.bf16.msra.mxu1 %v1842_v40  ;;  %v1029_v40 = vld [vmem:[#allocation2 + $0x400] sm:$0xff] }
 0x16a   : > { %1845 = vmatprep.subr.bf16.mxu1 %v1844_v41  ;;  %v1031_v41 = vld [vmem:[#allocation2 + $0x410] sm:$0xff] }
 0x16d   : > { %1847 = vmatpush1.bf16.msra.mxu1 %v1846_v8  ;;  %v1874_v8 = vpack.c.bf16 %v1031_v41, %v1029_v40  ;;  %v1067_v40 = vld [vmem:[#allocation2 + $0x530] sm:$0xff]  ;;  %v1070_v41 = vld [vmem:[#allocation2 + $0x548] sm:$0xff] }
 0x16e   : > { %1849 = vmatprep.subr.bf16.mxu1 %v1848_v47 }
 0x171   : > { %1851 = vmatpush1.bf16.msra.mxu1 %v1850_v53  ;;  %v1040_v53 = vld [vmem:[#allocation2 + $0x458] sm:$0xff] }
 0x172   : > { %1853 = vmatprep.subr.bf16.mxu1 %v1852_v54  ;;  %v1878_v54 = vpack.c.bf16 %v1035_v50, %v1033_v49  ;;  %v1880_v55 = vpack.c.bf16 %v1040_v53, %v1038_v51  ;;  %v1074_v49 = vld [vmem:[#allocation2 + $0x568] sm:$0xff]  ;;  %v1076_v50 = vld [vmem:[#allocation2 + $0x578] sm:$0xff] }
 0x173   : > { %v1916_v53 = vpack.c.bf16 %v1076_v50, %v1074_v49  ;;  %v981_v49 = vld [vmem:[#allocation2 + $0x288] sm:$0xff]  ;;  %v983_v50 = vld [vmem:[#allocation2 + $0x298] sm:$0xff] }
 0x175   : > { %1855 = vmatpush1.bf16.msra.mxu1 %v1854_v59  ;;  %v1044_v59 = vld [vmem:[#allocation2 + $0x478] sm:$0xff] }
 0x176   : > { %1857 = vmatprep.subr.bf16.mxu1 %v1856_v60  ;;  %v1882_v60 = vpack.c.bf16 %v1039_v57, %v1037_v56  ;;  %v1884_v61 = vpack.c.bf16 %v1044_v59, %v1042_v58  ;;  %v1078_v56 = vld [vmem:[#allocation2 + $0x588] sm:$0xff]  ;;  %v1080_v57 = vld [vmem:[#allocation2 + $0x598] sm:$0xff] }
 0x177   : > { %v1920_v59 = vpack.c.bf16 %v1080_v57, %v1078_v56 }
 0x179   : > { %1859 = vmatpush1.bf16.msra.mxu1 %v1858_v63  ;;  %v1043_v63 = vld [vmem:[#allocation2 + $0x470] sm:$0xff] }
 0x17a   : > { %1861 = vmatprep.subr.bf16.mxu1 %v1860_v2  ;;  %v1886_v2 = vpack.c.bf16 %v1043_v63, %v1041_v62  ;;  %v1082_v62 = vld [vmem:[#allocation2 + $0x5a8] sm:$0xff]  ;;  %v1084_v63 = vld [vmem:[#allocation2 + $0x5b8] sm:$0xff] }
 0x17b   : > { %v1924_v1 = vpack.c.bf16 %v1084_v63, %v1082_v62 }
 0x17d   : > { %1863 = vmatpush1.bf16.msra.mxu1 %v1862_v5  ;;  %v1047_v5 = vld [vmem:[#allocation2 + $0x490] sm:$0xff] }
 0x17e   : > { %1865 = vmatprep.subr.bf16.mxu1 %v1864_v11  ;;  %v1890_v9 = vpack.c.bf16 %v1047_v5, %v1045_v4  ;;  %v1049_v11 = vld [vmem:[#allocation2 + $0x4a0] sm:$0xff]  ;;  %v1086_v4 = vld [vmem:[#allocation2 + $0x5c8] sm:$0xff]  ;;  %v1088_v5 = vld [vmem:[#allocation2 + $0x5d8] sm:$0xff] }
 0x17f   : > { %v1894_v15 = vpack.c.bf16 %v1051_v12, %v1049_v11  ;;  %v1090_v11 = vld [vmem:[#allocation2 + $0x5e8] sm:$0xff]  ;;  %v1092_v12 = vld [vmem:[#allocation2 + $0x5f8] sm:$0xff] }
 0x180   : > { %v731_v6 = vpop.f32.mrb[2].mxu0 }
 0x181   : > { %v733_v7 = vpop.f32.mrb[3].mxu0  ;;  %1867 = vmatpush1.bf16.msra.mxu1 %v1866_v14  ;;  %v1056_v14 = vld [vmem:[#allocation2 + $0x4d8] sm:$0xff] }
 0x182   : > { %1869 = vmatprep.subr.bf16.mxu1 %v1868_v18  ;;  %v1896_v17 = vpack.c.bf16 %v1056_v14, %v1054_v13  ;;  %v1053_v18 = vld [vmem:[#allocation2 + $0x4c0] sm:$0xff]  ;;  %v1932_v14 = vpack.c.bf16 %v1092_v12, %v1090_v11 }
 0x183   : > { %v1898_v22 = vpack.c.bf16 %v1055_v19, %v1053_v18  ;;  %v965_v19 = vld [vmem:[#allocation2 + $0x208] sm:$0xff] }
 0x185   : > { %1871 = vmatpush1.bf16.msra.mxu1 %v1870_v21  ;;  %v1060_v21 = vld [vmem:[#allocation2 + $0x4f8] sm:$0xff] }
 0x186   : > { %1873 = vmatprep.subr.bf16.mxu1 %v1872_v24  ;;  %v1900_v23 = vpack.c.bf16 %v1060_v21, %v1058_v20  ;;  %v1057_v24 = vld [vmem:[#allocation2 + $0x4e0] sm:$0xff]  ;;  %v967_v20 = vld [vmem:[#allocation2 + $0x218] sm:$0xff] }
 0x187   : > { %v964_v21 = vld [vmem:[#allocation2 + $0x200] sm:$0xff] }
 0x217   : > { %v660_v25 = vpop.f32.mrb[2].mxu1 }
 0x218   : > { %v732_v28 = vadd.f32 %v731_v6, %v660_v25  ;;  %v662_v29 = vpop.f32.mrb[3].mxu1  ;;  %v1050_v6 = vld [vmem:[#allocation2 + $0x4a8] sm:$0xff]  ;;  %v1059_v25 = vld [vmem:[#allocation2 + $0x4f0] sm:$0xff] }
 0x219   : > { %v734_v30 = vadd.f32 %v733_v7, %v662_v29  ;;  %v1052_v7 = vld [vmem:[#allocation2 + $0x4b8] sm:$0xff]  ;;  %v1902_v29 = vpack.c.bf16 %v1059_v25, %v1057_v24 }
 0x21a   : > { %v1892_v10 = vpack.c.bf16 %v1052_v7, %v1050_v6  ;;  %v1928_v7 = vpack.c.bf16 %v1088_v5, %v1086_v4  ;;  %v971_v24 = vld [vmem:[#allocation2 + $0x238] sm:$0xff] }
 0x21b   : > { %v805_v32 = vpop.f32.mrb[4].mxu1 }
 0x21c   : > { %v810_v34 = vadd.f32 %v805_v32, %v732_v28  ;;  %v807_v36 = vpop.f32.mrb[5].mxu1  ;;  %v1064_v28 = vld [vmem:[#allocation2 + $0x518] sm:$0xff]  ;;  %v1063_v32 = vld [vmem:[#allocation2 + $0x510] sm:$0xff] }
 0x21d   : > { %v811_v38 = vadd.f32 %v807_v36, %v734_v30  ;;  %v1904_v30 = vpack.c.bf16 %v1064_v28, %v1062_v26  ;;  %v1936_v26 = vpack.c.bf16 %v967_v20, %v965_v19  ;;  %v1000_v20 = vld [vmem:[#allocation2 + $0x320] sm:$0xff] }
 0x21e   : > { %v824_v39 = vadd.f32 %v817_v31, %v810_v34  ;;  %v1061_v31 = vld [vmem:[#allocation2 + $0x500] sm:$0xff]  ;;  %v1068_v34 = vld [vmem:[#allocation2 + $0x538] sm:$0xff] }
 0x21f   : > { %v825_v42 = vadd.f32 %v821_v33, %v811_v38  ;;  %v1066_v33 = vld [vmem:[#allocation2 + $0x528] sm:$0xff]  ;;  %v1906_v36 = vpack.c.bf16 %v1063_v32, %v1061_v31  ;;  %v968_v31 = vld [vmem:[#allocation2 + $0x220] sm:$0xff]  ;;  %v970_v32 = vld [vmem:[#allocation2 + $0x230] sm:$0xff] }
 0x220   : > { %v2781_v47 = vmax.f32 %v824_v39, 0.0  ;;  %v1908_v38 = vpack.c.bf16 %v1068_v34, %v1066_v33  ;;  %v1065_v39 = vld [vmem:[#allocation2 + $0x520] sm:$0xff]  ;;  %v973_v33 = vld [vmem:[#allocation2 + $0x248] sm:$0xff]  ;;  %v975_v34 = vld [vmem:[#allocation2 + $0x258] sm:$0xff] }
 0x221   : > { %v2779_v45 = vmax.f32 %v825_v42, 0.0  ;;  %v1072_v42 = vld [vmem:[#allocation2 + $0x558] sm:$0xff]  ;;  %v1910_v43 = vpack.c.bf16 %v1067_v40, %v1065_v39  ;;  %v972_v39 = vld [vmem:[#allocation2 + $0x240] sm:$0xff]  ;;  %v974_v40 = vld [vmem:[#allocation2 + $0x250] sm:$0xff] }
 0x222   : > { %v1912_v44 = vpack.c.bf16 %v1072_v42, %v1070_v41  ;;  %v977_v41 = vld [vmem:[#allocation2 + $0x268] sm:$0xff]  ;;  %v979_v42 = vld [vmem:[#allocation2 + $0x278] sm:$0xff] }
 0x223   : > { %956 = vmatprep.mubr.f32.mxu1 %v2779_v45 }
 0x224   : > { %957 = vmatmul.mubr.f32.vlgmr.msra.gmra.mrb[6].mxu1 %v2781_v47 }
 0x225   : > { %1875 = vmatpush1.bf16.msra.mxu1 %v1874_v8  ;;  %1157 = vmatprep.mubr.f32.mxu1 %v2779_v45  ;;  %v1069_v8 = vld [vmem:[#allocation2 + $0x540] sm:$0xff] }
 0x226   : > { %1877 = vmatprep.subr.bf16.mxu1 %v1876_v48  ;;  %v1071_v48 = vld [vmem:[#allocation2 + $0x550] sm:$0xff] }
 0x227   : > { %v1914_v51 = vpack.c.bf16 %v1071_v48, %v1069_v8  ;;  %v976_v8 = vld [vmem:[#allocation2 + $0x260] sm:$0xff]  ;;  %v978_v48 = vld [vmem:[#allocation2 + $0x270] sm:$0xff] }
 0x229   : > { %1879 = vmatpush1.bf16.msra.mxu1 %v1878_v54  ;;  %v1073_v54 = vld [vmem:[#allocation2 + $0x560] sm:$0xff] }
 0x22a   : > { %1881 = vmatprep.subr.bf16.mxu1 %v1880_v55  ;;  %v1075_v55 = vld [vmem:[#allocation2 + $0x570] sm:$0xff] }
 0x22b   : > { %v1918_v58 = vpack.c.bf16 %v1075_v55, %v1073_v54  ;;  %v985_v54 = vld [vmem:[#allocation2 + $0x2a8] sm:$0xff]  ;;  %v987_v55 = vld [vmem:[#allocation2 + $0x2b8] sm:$0xff] }
 0x22c   : > { %v1956_v57 = vpack.c.bf16 %v987_v55, %v985_v54  ;;  %v1020_v54 = vld [vmem:[#allocation2 + $0x3c0] sm:$0xff]  ;;  %v1022_v55 = vld [vmem:[#allocation2 + $0x3d0] sm:$0xff] }
 0x22d   : > { %1883 = vmatpush1.bf16.msra.mxu1 %v1882_v60  ;;  %v1077_v60 = vld [vmem:[#allocation2 + $0x580] sm:$0xff] }
 0x22e   : > { %1885 = vmatprep.subr.bf16.mxu1 %v1884_v61  ;;  %v1079_v61 = vld [vmem:[#allocation2 + $0x590] sm:$0xff] }
 0x22f   : > { %v1922_v0 = vpack.c.bf16 %v1079_v61, %v1077_v60  ;;  %v989_v60 = vld [vmem:[#allocation2 + $0x2c8] sm:$0xff]  ;;  %v991_v61 = vld [vmem:[#allocation2 + $0x2d8] sm:$0xff] }
 0x230   : > { %v1960_v63 = vpack.c.bf16 %v991_v61, %v989_v60  ;;  %v1024_v60 = vld [vmem:[#allocation2 + $0x3e0] sm:$0xff]  ;;  %v1026_v61 = vld [vmem:[#allocation2 + $0x3f0] sm:$0xff] }
 0x231   : > { %1887 = vmatpush1.bf16.msra.mxu1 %v1886_v2  ;;  %v1081_v2 = vld [vmem:[#allocation2 + $0x5a0] sm:$0xff] }
 0x232   : > { %1889 = vmatprep.subr.bf16.mxu1 %v1888_v3  ;;  %v1083_v3 = vld [vmem:[#allocation2 + $0x5b0] sm:$0xff] }
 0x233   : > { %v1926_v6 = vpack.c.bf16 %v1083_v3, %v1081_v2  ;;  %v993_v2 = vld [vmem:[#allocation2 + $0x2e8] sm:$0xff]  ;;  %v995_v3 = vld [vmem:[#allocation2 + $0x2f8] sm:$0xff] }
 0x234   : > { %v1964_v5 = vpack.c.bf16 %v995_v3, %v993_v2 }
 0x235   : > { %1891 = vmatpush1.bf16.msra.mxu1 %v1890_v9  ;;  %v1085_v9 = vld [vmem:[#allocation2 + $0x5c0] sm:$0xff] }
 0x236   : > { %1893 = vmatprep.subr.bf16.mxu1 %v1892_v10  ;;  %v1087_v10 = vld [vmem:[#allocation2 + $0x5d0] sm:$0xff] }
 0x237   : > { %v1930_v13 = vpack.c.bf16 %v1087_v10, %v1085_v9  ;;  %v997_v9 = vld [vmem:[#allocation2 + $0x308] sm:$0xff]  ;;  %v999_v10 = vld [vmem:[#allocation2 + $0x318] sm:$0xff] }
 0x238   : > { %v1968_v12 = vpack.c.bf16 %v999_v10, %v997_v9 }
 0x239   : > { %1895 = vmatpush1.bf16.msra.mxu1 %v1894_v15  ;;  %v1089_v15 = vld [vmem:[#allocation2 + $0x5e0] sm:$0xff] }
 0x23a   : > { %1897 = vmatprep.subr.bf16.mxu1 %v1896_v17  ;;  %v1091_v17 = vld [vmem:[#allocation2 + $0x5f0] sm:$0xff] }
 0x23b   : > { %v1934_v18 = vpack.c.bf16 %v1091_v17, %v1089_v15  ;;  %v1001_v15 = vld [vmem:[#allocation2 + $0x328] sm:$0xff]  ;;  %v1003_v17 = vld [vmem:[#allocation2 + $0x338] sm:$0xff] }
 0x23c   : > { %v1972_v19 = vpack.c.bf16 %v1003_v17, %v1001_v15 }
 0x23d   : > { %1899 = vmatpush1.bf16.msra.mxu1 %v1898_v22  ;;  %v966_v22 = vld [vmem:[#allocation2 + $0x210] sm:$0xff] }
 0x23e   : > { %1901 = vmatprep.subr.bf16.mxu1 %v1900_v23  ;;  %v969_v23 = vld [vmem:[#allocation2 + $0x228] sm:$0xff] }
 0x241   : > { %1903 = vmatpush1.bf16.msra.mxu1 %v1902_v29  ;;  %v1938_v29 = vpack.c.bf16 %v966_v22, %v964_v21  ;;  %v1002_v21 = vld [vmem:[#allocation2 + $0x330] sm:$0xff]  ;;  %v1005_v22 = vld [vmem:[#allocation2 + $0x348] sm:$0xff] }
 0x242   : > { %1905 = vmatprep.subr.bf16.mxu1 %v1904_v30  ;;  %v1940_v30 = vpack.c.bf16 %v971_v24, %v969_v23  ;;  %v1007_v23 = vld [vmem:[#allocation2 + $0x358] sm:$0xff]  ;;  %v1974_v24 = vpack.c.bf16 %v1002_v21, %v1000_v20 }
 0x245   : > { %1907 = vmatpush1.bf16.msra.mxu1 %v1906_v36  ;;  %v1942_v36 = vpack.c.bf16 %v970_v32, %v968_v31 }
 0x246   : > { %1909 = vmatprep.subr.bf16.mxu1 %v1908_v38  ;;  %v1944_v38 = vpack.c.bf16 %v975_v34, %v973_v33  ;;  %v1008_v33 = vld [vmem:[#allocation2 + $0x360] sm:$0xff]  ;;  %v1010_v34 = vld [vmem:[#allocation2 + $0x370] sm:$0xff] }
 0x249   : > { %1911 = vmatpush1.bf16.msra.mxu1 %v1910_v43  ;;  %v1946_v43 = vpack.c.bf16 %v974_v40, %v972_v39  ;;  %v1982_v39 = vpack.c.bf16 %v1010_v34, %v1008_v33 }
 0x24a   : > { %1913 = vmatprep.subr.bf16.mxu1 %v1912_v44  ;;  %v1948_v44 = vpack.c.bf16 %v979_v42, %v977_v41  ;;  %v1012_v41 = vld [vmem:[#allocation2 + $0x380] sm:$0xff]  ;;  %v1014_v42 = vld [vmem:[#allocation2 + $0x390] sm:$0xff] }
 0x24d   : > { %1915 = vmatpush1.bf16.msra.mxu1 %v1914_v51  ;;  %v1952_v51 = vpack.c.bf16 %v983_v50, %v981_v49  ;;  %v1016_v49 = vld [vmem:[#allocation2 + $0x3a0] sm:$0xff]  ;;  %v1018_v50 = vld [vmem:[#allocation2 + $0x3b0] sm:$0xff] }
 0x24e   : > { %1917 = vmatprep.subr.bf16.mxu1 %v1916_v53  ;;  %v982_v53 = vld [vmem:[#allocation2 + $0x290] sm:$0xff] }
 0x251   : > { %1919 = vmatpush1.bf16.msra.mxu1 %v1918_v58  ;;  %v984_v58 = vld [vmem:[#allocation2 + $0x2a0] sm:$0xff] }
 0x252   : > { %1921 = vmatprep.subr.bf16.mxu1 %v1920_v59  ;;  %v986_v59 = vld [vmem:[#allocation2 + $0x2b0] sm:$0xff] }
 0x253   : > { %v1958_v62 = vpack.c.bf16 %v986_v59, %v984_v58  ;;  %v1994_v58 = vpack.c.bf16 %v1022_v55, %v1020_v54 }
 0x255   : > { %1923 = vmatpush1.bf16.msra.mxu1 %v1922_v0  ;;  %v988_v0 = vld [vmem:[#allocation2 + $0x2c0] sm:$0xff] }
 0x256   : > { %1925 = vmatprep.subr.bf16.mxu1 %v1924_v1  ;;  %v990_v1 = vld [vmem:[#allocation2 + $0x2d0] sm:$0xff] }
 0x257   : > { %v1962_v4 = vpack.c.bf16 %v990_v1, %v988_v0  ;;  %v1379_v1 = vld [vmem:[%s2815_s4] sm:$0x3] }
 0x258   : > { %v1384_v2 = vrot.slane %v1379_v1, %v816_v16  ;;  %v1388_v3 = vrot.slane %v1379_v1, %v820_v27 }
 0x259   : > { %1927 = vmatpush1.bf16.msra.mxu1 %v1926_v6  ;;  %v992_v6 = vld [vmem:[#allocation2 + $0x2e0] sm:$0xff] }
 0x25a   : > { %1929 = vmatprep.subr.bf16.mxu1 %v1928_v7  ;;  %v994_v7 = vld [vmem:[#allocation2 + $0x2f0] sm:$0xff] }
 0x25b   : > { %v1966_v11 = vpack.c.bf16 %v994_v7, %v992_v6  ;;  %v2030_v7 = vld [vmem:[%s2439_s14] sm:$0xff] }
 0x25d   : > { %1931 = vmatpush1.bf16.msra.mxu1 %v1930_v13  ;;  %v996_v13 = vld [vmem:[#allocation2 + $0x300] sm:$0xff] }
 0x25e   : > { %1933 = vmatprep.subr.bf16.mxu1 %v1932_v14  ;;  %v998_v14 = vld [vmem:[#allocation2 + $0x310] sm:$0xff] }
 0x261   : > { %1935 = vmatpush1.bf16.msra.mxu1 %v1934_v18  ;;  %v1970_v18 = vpack.c.bf16 %v998_v14, %v996_v13 }
 0x264   : > { %1158 = vmatmul.mubr.f32.vlgmr.msra.gmra.mrb[8].mxu1 %v2781_v47 }
 0x2f7   : > { %v958_v25 = vpop.f32.mrb[6].mxu1 }
 0x2f8   : > { %v960_v28 = vpop.f32.mrb[7].mxu1 }
 0x2f9   : > { %1164 = vmatprep.subr.mxu0 %v960_v28  ;;  %v1006_v28 = vld [vmem:[#allocation2 + $0x350] sm:$0xff] }
 0x2fa   : > { %1165 = vmatpush1.msra.mxu0 %v958_v25  ;;  %v1976_v25 = vpack.c.bf16 %v1007_v23, %v1005_v22 }
 0x2fb   : > { %1610 = vmatmul.mubr.msk.f32.vlgmr.msra.gmra.mrb[4].mxu0 %vm590_vm1, %v2760_v46  ;;  %1937 = vmatprep.subr.bf16.mxu0 %v1936_v26  ;;  %v1950_v46 = vpack.c.bf16 %v978_v48, %v976_v8  ;;  %v1004_v26 = vld [vmem:[#allocation2 + $0x340] sm:$0xff]  ;;  %v1986_v8 = vpack.c.bf16 %v1014_v42, %v1012_v41 }
 0x2fc   : > { %1939 = vmatpush1.bf16.msra.mxu0 %v1938_v29  ;;  %1299 = vmatprep.mubr.f32.mxu0 %v2779_v45  ;;  %v980_v45 = vld [vmem:[#allocation2 + $0x280] sm:$0xff]  ;;  %v1009_v29 = vld [vmem:[#allocation2 + $0x368] sm:$0xff]  ;;  %v1978_v31 = vpack.c.bf16 %v1006_v28, %v1004_v26 }
 0x2fd   : > { %1941 = vmatprep.subr.bf16.mxu0 %v1940_v30  ;;  %v1954_v56 = vpack.c.bf16 %v982_v53, %v980_v45  ;;  %v1011_v30 = vld [vmem:[#allocation2 + $0x378] sm:$0xff]  ;;  %v1990_v45 = vpack.c.bf16 %v1018_v50, %v1016_v49 }
 0x2fe   : > { %v1980_v32 = vpack.c.bf16 %v1011_v30, %v1009_v29 }
 0x300   : > { %1943 = vmatpush1.bf16.msra.mxu0 %v1942_v36  ;;  %v1013_v36 = vld [vmem:[#allocation2 + $0x388] sm:$0xff] }
 0x301   : > { %1945 = vmatprep.subr.bf16.mxu0 %v1944_v38  ;;  %v1015_v38 = vld [vmem:[#allocation2 + $0x398] sm:$0xff] }
 0x302   : > { %v1984_v40 = vpack.c.bf16 %v1015_v38, %v1013_v36 }
 0x304   : > { %1947 = vmatpush1.bf16.msra.mxu0 %v1946_v43  ;;  %v1017_v43 = vld [vmem:[#allocation2 + $0x3a8] sm:$0xff] }
 0x305   : > { %1949 = vmatprep.subr.bf16.mxu0 %v1948_v44  ;;  %v1019_v44 = vld [vmem:[#allocation2 + $0x3b8] sm:$0xff] }
 0x306   : > { %v1988_v48 = vpack.c.bf16 %v1019_v44, %v1017_v43 }
 0x308   : > { %1951 = vmatpush1.bf16.msra.mxu0 %v1950_v46  ;;  %v1021_v46 = vld [vmem:[#allocation2 + $0x3c8] sm:$0xff] }
 0x309   : > { %1953 = vmatprep.subr.bf16.mxu0 %v1952_v51  ;;  %v1023_v51 = vld [vmem:[#allocation2 + $0x3d8] sm:$0xff] }
 0x30a   : > { %v1992_v53 = vpack.c.bf16 %v1023_v51, %v1021_v46 }
 0x30c   : > { %1955 = vmatpush1.bf16.msra.mxu0 %v1954_v56  ;;  %v1025_v56 = vld [vmem:[#allocation2 + $0x3e8] sm:$0xff] }
 0x30d   : > { %1957 = vmatprep.subr.bf16.mxu0 %v1956_v57  ;;  %v1027_v57 = vld [vmem:[#allocation2 + $0x3f8] sm:$0xff] }
 0x30e   : > { %v1996_v59 = vpack.c.bf16 %v1027_v57, %v1025_v56 }
 0x310   : > { %1959 = vmatpush1.bf16.msra.mxu0 %v1958_v62  ;;  %v1998_v62 = vpack.c.bf16 %v1026_v61, %v1024_v60 }
 0x311   : > { %1961 = vmatprep.subr.bf16.mxu0 %v1960_v63 }
 0x314   : > { %1963 = vmatpush1.bf16.msra.mxu0 %v1962_v4 }
 0x315   : > { %1965 = vmatprep.subr.bf16.mxu0 %v1964_v5 }
 0x318   : > { %1967 = vmatpush1.bf16.msra.mxu0 %v1966_v11 }
 0x319   : > { %1969 = vmatprep.subr.bf16.mxu0 %v1968_v12 }
 0x31c   : > { %1971 = vmatpush1.bf16.msra.mxu0 %v1970_v18 }
 0x31d   : > { %1973 = vmatprep.subr.bf16.mxu0 %v1972_v19 }
 0x320   : > { %1975 = vmatpush1.bf16.msra.mxu0 %v1974_v24 }
 0x321   : > { %1977 = vmatprep.subr.bf16.mxu0 %v1976_v25 }
 0x324   : > { %1979 = vmatpush1.bf16.msra.mxu0 %v1978_v31 }
 0x325   : > { %1981 = vmatprep.subr.bf16.mxu0 %v1980_v32 }
 0x328   : > { %1983 = vmatpush1.bf16.msra.mxu0 %v1982_v39 }
 0x329   : > { %1985 = vmatprep.subr.bf16.mxu0 %v1984_v40 }
 0x32c   : > { %1987 = vmatpush1.bf16.msra.mxu0 %v1986_v8 }
 0x32d   : > { %1989 = vmatprep.subr.bf16.mxu0 %v1988_v48 }
 0x330   : > { %1991 = vmatpush1.bf16.msra.mxu0 %v1990_v45 }
 0x331   : > { %1993 = vmatprep.subr.bf16.mxu0 %v1992_v53 }
 0x334   : > { %1995 = vmatpush1.bf16.msra.mxu0 %v1994_v58 }
 0x335   : > { %1997 = vmatprep.subr.bf16.mxu0 %v1996_v59 }
 0x337   : > { %v1159_v63 = vpop.f32.mrb[8].mxu1 }
 0x338   : > { %v1161_v0 = vpop.f32.mrb[9].mxu1  ;;  %1999 = vmatpush1.bf16.msra.mxu0 %v1998_v62 }
 0x339   : > { %1306 = vmatprep.subr.mxu0 %v1161_v0 }
 0x33b   : > { %1300 = vmatmul.mubr.f32.vlgmr.msra.gmra.mrb[4].mxu0 %v2781_v47 }
 0x33c   : > { %1307 = vmatpush1.msra.mxu0 %v1159_v63  ;;  %1370 = vmatprep.mubr.f32.mxu0 %v2075_v35  ;;  %v2031_v35 = vld [vmem:[%s2439_s14 + $0x8] sm:$0xff] }
 0x343   : > { %1611 = vmatmul.mubr.msk.f32.vlgmr.msra.gmra.mrb[4].mxu0 %vm590_vm1, %v2766_v52 }
 0x416   : > { %v1372_v4 = vpop.f32.mrb[4].mxu0 }
 0x417   : > { %v1391_v5 = vadd.f32 %v1384_v2, %v1372_v4  ;;  %v1374_v6 = vpop.f32.mrb[5].mxu0 }
 0x418   : > { %v1392_v47 = vadd.f32 %v1388_v3, %v1374_v6 }
 0x419   : > { %v1393_v9 = vadd.f32 %v2030_v7, %v1391_v5 }
 0x41a   : > { %v1394_v52 = vadd.f32 %v2031_v35, %v1392_v47 }
 0x41b   : > { %v1395_v10 = vmax.f32 %v1393_v9, 0.0 }
 0x41c   : > { %v1396_v11 = vmax.f32 %v1394_v52, 0.0 }
 0x41d   : > { %1397 = vst [vmem:[%s239_s10] sm:$0xff] %v1395_v10 }
 0x41e   : > { %1398 = vst [vmem:[%s239_s10 + $0x8] sm:$0xff] %v1396_v11 }
 0x41f PF: > { %s16_s18 = sadd.s32 1, %s2070_s18  }
 0x420   : > { %p13_p3 = scmp.ge.s32.totalorder %s16_s18, 4  }
 0x422   :  { %15 = sbr.rel (!%p13_p3) target bundleno = 1 (0x1), region = 79 }
 0x429   :  { %1420 = vsyncpa [#allocation3], 1 }
 0x42a   :  { %1422 = vsyncpa [#allocation3 + $0x1], 1 }

</bundles_post_ra>
